<compile_context>
chip_gen: v5e
topology: v5e:2x2
jax: 0.10.0
libtpu: 0.0.40
codegen_flags: <defaults>
</compile_context>

<pallas_src>
import functools

import jax
import jax.numpy as jnp
import numpy as np
from jax import lax
from jax.experimental import pallas as pl
from jax.experimental.pallas import tpu as pltpu


# ----------------------------------------------------------------------------
# Fused Pallas kernel (channels-first, spatial-in-lanes)
# ----------------------------------------------------------------------------
def _hyptube_kernel(x_ref, mask_ref, wenc_ref, benc_ref, wlev_ref, blev_ref,
                    wdec_ref, bdec_ref, y_ref, col_ref, *, W, hc, levels):
    # x_ref    : (1, Cin, HW)            one image, spatial flattened into lanes
    # mask_ref : (9, HW)                 per-tap border-validity masks (0/1 f32)
    # wenc_ref : (6*hc, 9*Cin)           encoder weights (out chans permuted)
    # benc_ref : (6*hc, 1)
    # wlev_ref : (levels, 6*hc, 9*6*hc)  level weights (in+out chans permuted)
    # blev_ref : (6*hc, levels)
    # wdec_ref : (Cout, 9*hc)
    # bdec_ref : (Cout, 1)
    # y_ref    : (1, Cout, HW)
    # col_ref  : (9*max_cin, HW) VMEM    im2col staging slab (lane-dense)
    HW = x_ref.shape[-1]
    c6 = 6 * hc

    # Tap t = (dy+1)*3 + (dx+1); shifted source position is p + dy*W + dx.
    offs = [dy * W + dx for dy in (-1, 0, 1) for dx in (-1, 0, 1)]

    def conv3x3(act, w_mat, bias_col):
        # act (Cin, HW) -> (Cout, HW).  Taps via lane rolls (XLU) + masks
        # (VPU), staged in VMEM, then ONE lane-dense MXU matmul.
        cin = act.shape[0]
        for t in range(9):
            off = offs[t]
            tap = act if off == 0 else pltpu.roll(act, shift=(-off) % HW, axis=1)
            col_ref[t * cin:(t + 1) * cin, :] = tap * mask_ref[t:t + 1, :]
        return jnp.dot(w_mat, col_ref[0:9 * cin, :],
                       preferred_element_type=jnp.float32) + bias_col

    # ---- encoder: x -> flow (permuted channel layout [u|v|a0|m0|a1|m1]) ----
    flow = conv3x3(x_ref[0].astype(jnp.float32), wenc_ref[...], benc_ref[...])

    # ---- levels: conv + fused channel split + leveled elementwise update ---
    out = jnp.zeros((hc, HW), jnp.float32)
    for j in range(levels):
        flow = conv3x3(flow, wlev_ref[j], blev_ref[:, j:j + 1])
        u, v = flow[0 * hc:1 * hc], flow[1 * hc:2 * hc]
        a0, m0 = flow[2 * hc:3 * hc], flow[3 * hc:4 * hc]
        a1, m1 = flow[4 * hc:5 * hc], flow[5 * hc:6 * hc]
        out = (out + a0 * u) * (1.0 + m0 * v)   # ix = 0
        out = (out + a1 * u) * (1.0 + m1 * v)   # ix = 1

    # ---- decoder: out -> y --------------------------------------------------
    y_ref[0] = conv3x3(out, wdec_ref[...], bdec_ref[...]).astype(y_ref.dtype)


def _hyptube_pallas(x, masks, kp, W):
    B, cin, HW = x.shape
    c6 = kp["wenc"].shape[0]
    hc = c6 // 6
    levels = kp["wlev"].shape[0]
    cout = kp["wdec"].shape[0]
    kmax = 9 * max(cin, c6, hc)

    kernel = functools.partial(_hyptube_kernel, W=W, hc=hc, levels=levels)

    return pl.pallas_call(
        kernel,
        out_shape=jax.ShapeDtypeStruct((B, cout, HW), jnp.float32),
        grid_spec=pltpu.PrefetchScalarGridSpec(
            num_scalar_prefetch=0,
            grid=(B,),
            in_specs=[
                pl.BlockSpec((1, cin, HW), lambda b: (b, 0, 0)),
                pl.BlockSpec((9, HW), lambda b: (0, 0)),
                pl.BlockSpec((c6, 9 * cin), lambda b: (0, 0)),
                pl.BlockSpec((c6, 1), lambda b: (0, 0)),
                pl.BlockSpec((levels, c6, 9 * c6), lambda b: (0, 0, 0)),
                pl.BlockSpec((c6, levels), lambda b: (0, 0)),
                pl.BlockSpec((cout, 9 * hc), lambda b: (0, 0)),
                pl.BlockSpec((cout, 1), lambda b: (0, 0)),
            ],
            out_specs=pl.BlockSpec((1, cout, HW), lambda b: (b, 0, 0)),
            scratch_shapes=[pltpu.VMEM((kmax, HW), jnp.float32)],
        ),
        compiler_params=pltpu.CompilerParams(
            dimension_semantics=("parallel",)),
    )(x, masks, kp["wenc"], kp["benc"], kp["wlev"], kp["blev"],
      kp["wdec"], kp["bdec"])


def _tap_masks(H, W):
    """(9, H*W) f32 validity masks for the 9 taps of a 3x3 'same' conv.

    Positions where a lane roll would wrap across a row / image border are
    exactly the positions a zero-padded conv would read zeros from, so
    roll + mask reproduces PyTorch Conv2d(padding=1) semantics exactly.
    """
    yy, xx = np.mgrid[0:H, 0:W]
    rows = []
    for dy in (-1, 0, 1):
        for dx in (-1, 0, 1):
            valid = ((yy + dy >= 0) & (yy + dy < H) &
                     (xx + dx >= 0) & (xx + dx < W))
            rows.append(valid.reshape(-1))
    return jnp.asarray(np.stack(rows), dtype=jnp.float32)


@jax.jit
def leveled_hyp_tube_forward(x_nchw, kparams):
    """LeveledHypTube forward: (B, Cin, H, W) -> (B, Cout, H, W)."""
    B, cin, H, W = x_nchw.shape
    x = x_nchw.reshape(B, cin, H * W).astype(jnp.float32)   # NCHW consumed directly
    masks = _tap_masks(H, W)                                # trace-time constant
    y = _hyptube_pallas(x, masks, kparams, W)               # (B, Cout, H*W)
    return y.reshape(B, y.shape[1], H, W)                   # NCHW out, no transpose


# ----------------------------------------------------------------------------
# Parameters (deterministic synthetic) + one-time repack into kernel layout
# ----------------------------------------------------------------------------
def init_params(key, in_channels, hidden_channels, out_channels, levels):
    """Synthetic parameters in 'torch layout' (HWIO weights, unpermuted)."""
    hc6 = 6 * hidden_channels
    keys = jax.random.split(key, 3 + levels)

    def conv_init(k, cin, cout):
        kw, kb = jax.random.split(k)
        scale = 1.0 / jnp.sqrt(9.0 * cin)
        w = scale * jax.random.normal(kw, (3, 3, cin, cout), jnp.float32)
        b = scale * jax.random.normal(kb, (cout,), jnp.float32)
        return w, b

    return {
        "enc": conv_init(keys[0], in_channels, hc6),                 # encoder
        "dec": conv_init(keys[1], hidden_channels, out_channels),    # decoder
        "lev": [conv_init(keys[2 + j], hc6, hc6) for j in range(levels)],
    }


def prepare_params(params, hidden_channels):
    """Repack torch-layout params into the fused-kernel layout.

    * Flow channels are relabeled from the interleaved torch view (hc, 2, 2)
      to contiguous groups [u | v | a0 | m0 | a1 | m1]; the permutation is
      applied to the encoder's output channels and to both input and output
      channels of every level conv, so it is a pure internal relabeling.
    * Weights become (Cout, 9*Cin) with rows ordered tap-major / in-chan-minor
      (tap t = ky*3 + kx), matching the in-kernel im2col slab; biases become
      (Cout, 1) columns so the epilogue add is a lane broadcast.
    """
    hc = hidden_channels
    c6 = 6 * hc
    perm = list(range(2 * hc))
    for ix in range(2):          # level-update step ix = 0, 1
        for am in range(2):      # 0 -> a (additive), 1 -> m (multiplicative)
            perm += [2 * hc + 4 * c + 2 * ix + am for c in range(hc)]
    perm = np.asarray(perm)

    def pack(w_hwio, in_perm=None, out_perm=None):
        w = w_hwio
        if in_perm is not None:
            w = w[:, :, in_perm, :]
        if out_perm is not None:
            w = w[:, :, :, out_perm]
        cout = w.shape[3]
        # (3,3,Cin,Cout) -> (Cout, 9*Cin), rows tap-major / in-chan-minor.
        return jnp.transpose(w, (3, 0, 1, 2)).reshape(cout, -1)

    wenc, benc = params["enc"]
    wdec, bdec = params["dec"]

    return {
        "wenc": pack(wenc, out_perm=perm),                              # (c6, 9*cin)
        "benc": benc[perm].reshape(c6, 1),
        "wlev": jnp.stack([pack(w, in_perm=perm, out_perm=perm)
                           for (w, _) in params["lev"]], axis=0),        # (L, c6, 9*c6)
        "blev": jnp.stack([b[perm] for (_, b) in params["lev"]], axis=1),  # (c6, L)
        "wdec": pack(wdec),                                              # (cout, 9*hc)
        "bdec": bdec.reshape(-1, 1),                                     # (cout, 1)
    }


# ----------------------------------------------------------------------------
# Pure-JAX reference (mirrors the PyTorch module with torch-layout params)
# ----------------------------------------------------------------------------
def _conv3x3_ref(x_nhwc, w, b):
    y = lax.conv_general_dilated(
        x_nhwc, w, window_strides=(1, 1), padding="SAME",
        dimension_numbers=("NHWC", "HWIO", "NHWC"),
        precision=lax.Precision.HIGHEST)
    return y + b


def reference_forward(x_nchw, params, hidden_channels, levels):
    hc = hidden_channels
    x = jnp.transpose(x_nchw, (0, 2, 3, 1)).astype(jnp.float32)
    B, H, W, _ = x.shape
    flow = _conv3x3_ref(x, *params["enc"])
    out = jnp.zeros((B, H, W, hc), jnp.float32)
    for j in range(levels):
        flow = _conv3x3_ref(flow, *params["lev"][j])
        u = flow[..., :hc]
        v = flow[..., hc:2 * hc]
        p = flow[..., 2 * hc:].reshape(B, H, W, hc, 2, 2)
        for ix in range(2):
            out = (out + p[..., ix, 0] * u) * (1.0 + p[..., ix, 1] * v)
    y = _conv3x3_ref(out, *params["dec"])
    return jnp.transpose(y, (0, 3, 1, 2))


if __name__ == "__main__":
    in_channels, hidden_channels, out_channels, levels = 4, 4, 3, 2
    B, H, W = 2, 16, 16

    key = jax.random.PRNGKey(0)
    kx, kparam = jax.random.split(key)
    x = jax.random.normal(kx, (B, in_channels, H, W), jnp.float32)
    params = init_params(kparam, in_channels, hidden_channels, out_channels, levels)
    kparams = prepare_params(params, hidden_channels)

    y = leveled_hyp_tube_forward(x, kparams)
    jax.block_until_ready(y)
    assert y.shape == (B, out_channels, H, W), y.shape
    assert bool(jnp.all(jnp.isfinite(y)))

    # Correctness check against a pure-JAX mirror of the torch module
    # (HIGHEST-precision convs).  Tolerance tightened 50x vs the previous
    # version; the kernel keeps f32 operands + f32 MXU accumulation.
    y_ref = reference_forward(x, params, hidden_channels, levels)
    rel_err = float(jnp.max(jnp.abs(y - y_ref)) /
                    (jnp.max(jnp.abs(y_ref)) + 1e-6))
    assert rel_err < 1e-3, f"mismatch vs reference: rel_max_err={rel_err}"
    print("KERNEL_OK")
</pallas_src>

<mosaic_0001>
module attributes {stable_mosaic.version = 11 : i64} {
  func.func @_hyptube_kernel(%arg0: i32, %arg1: memref<1x4x256xf32, #tpu.memory_space<vmem>>, %arg2: memref<9x256xf32, #tpu.memory_space<vmem>>, %arg3: memref<24x36xf32, #tpu.memory_space<vmem>>, %arg4: memref<24x1xf32, #tpu.memory_space<vmem>>, %arg5: memref<2x24x216xf32, #tpu.memory_space<vmem>>, %arg6: memref<24x2xf32, #tpu.memory_space<vmem>>, %arg7: memref<3x36xf32, #tpu.memory_space<vmem>>, %arg8: memref<3x1xf32, #tpu.memory_space<vmem>>, %arg9: memref<1x3x256xf32, #tpu.memory_space<vmem>>, %arg10: memref<216x256xf32, #tpu.memory_space<vmem>>) attributes {dimension_semantics = [#tpu.dimension_semantics<parallel>], iteration_bounds = array<i64: 2>, scalar_prefetch = 0 : i64, scratch_operands = 1 : i64, tpu.core_type = #tpu.core_type<tc>, window_params = [{transform_indices = @transform_0, window_bounds = array<i64: 1, 4, 256>}, {pipeline_mode = #tpu.pipeline_mode<synchronous>, transform_indices = @transform_1, window_bounds = array<i64: 9, 256>}, {pipeline_mode = #tpu.pipeline_mode<synchronous>, transform_indices = @transform_2, window_bounds = array<i64: 24, 36>}, {pipeline_mode = #tpu.pipeline_mode<synchronous>, transform_indices = @transform_3, window_bounds = array<i64: 24, 1>}, {pipeline_mode = #tpu.pipeline_mode<synchronous>, transform_indices = @transform_4, window_bounds = array<i64: 2, 24, 216>}, {pipeline_mode = #tpu.pipeline_mode<synchronous>, transform_indices = @transform_5, window_bounds = array<i64: 24, 2>}, {pipeline_mode = #tpu.pipeline_mode<synchronous>, transform_indices = @transform_6, window_bounds = array<i64: 3, 36>}, {pipeline_mode = #tpu.pipeline_mode<synchronous>, transform_indices = @transform_7, window_bounds = array<i64: 3, 1>}, {transform_indices = @transform_8, window_bounds = array<i64: 1, 3, 256>}]} {
    %c0 = arith.constant 0 : index
    %c0_0 = arith.constant 0 : index
    %c0_1 = arith.constant 0 : index
    %0 = vector.load %arg1[%c0, %c0_0, %c0_1] : memref<1x4x256xf32, #tpu.memory_space<vmem>>, vector<1x4x256xf32>
    %1 = vector.shape_cast %0 : vector<1x4x256xf32> to vector<4x256xf32>
    %c0_2 = arith.constant 0 : index
    %c0_3 = arith.constant 0 : index
    %2 = vector.load %arg3[%c0_2, %c0_3] : memref<24x36xf32, #tpu.memory_space<vmem>>, vector<24x36xf32>
    %c0_4 = arith.constant 0 : index
    %c0_5 = arith.constant 0 : index
    %3 = vector.load %arg4[%c0_4, %c0_5] : memref<24x1xf32, #tpu.memory_space<vmem>>, vector<24x1xf32>
    %c17_i32 = arith.constant 17 : i32
    %4 = tpu.dynamic_rotate %1 by %c17_i32 dim 1 : vector<4x256xf32>, i32 -> vector<4x256xf32>
    %c0_6 = arith.constant 0 : index
    %c0_7 = arith.constant 0 : index
    %5 = vector.load %arg2[%c0_6, %c0_7] : memref<9x256xf32, #tpu.memory_space<vmem>>, vector<1x256xf32>
    %6 = vector.broadcast %5 : vector<1x256xf32> to vector<4x256xf32>
    %7 = arith.mulf %4, %6 : vector<4x256xf32>
    %c0_8 = arith.constant 0 : index
    %c0_9 = arith.constant 0 : index
    %8 = vector.load %arg10[%c0_8, %c0_9] : memref<216x256xf32, #tpu.memory_space<vmem>>, vector<4x256xf32>
    tpu.vector_store %arg10[%c0_8, %c0_9], %7 {strides = array<i32>} : memref<216x256xf32, #tpu.memory_space<vmem>>, vector<4x256xf32>,
    %c16_i32 = arith.constant 16 : i32
    %9 = tpu.dynamic_rotate %1 by %c16_i32 dim 1 : vector<4x256xf32>, i32 -> vector<4x256xf32>
    %c1 = arith.constant 1 : index
    %c0_10 = arith.constant 0 : index
    %10 = vector.load %arg2[%c1, %c0_10] : memref<9x256xf32, #tpu.memory_space<vmem>>, vector<1x256xf32>
    %11 = vector.broadcast %10 : vector<1x256xf32> to vector<4x256xf32>
    %12 = arith.mulf %9, %11 : vector<4x256xf32>
    %c4 = arith.constant 4 : index
    %c0_11 = arith.constant 0 : index
    %13 = vector.load %arg10[%c4, %c0_11] : memref<216x256xf32, #tpu.memory_space<vmem>>, vector<4x256xf32>
    tpu.vector_store %arg10[%c4, %c0_11], %12 {strides = array<i32>} : memref<216x256xf32, #tpu.memory_space<vmem>>, vector<4x256xf32>,
    %c15_i32 = arith.constant 15 : i32
    %14 = tpu.dynamic_rotate %1 by %c15_i32 dim 1 : vector<4x256xf32>, i32 -> vector<4x256xf32>
    %c2 = arith.constant 2 : index
    %c0_12 = arith.constant 0 : index
    %15 = vector.load %arg2[%c2, %c0_12] : memref<9x256xf32, #tpu.memory_space<vmem>>, vector<1x256xf32>
    %16 = vector.broadcast %15 : vector<1x256xf32> to vector<4x256xf32>
    %17 = arith.mulf %14, %16 : vector<4x256xf32>
    %c8 = arith.constant 8 : index
    %c0_13 = arith.constant 0 : index
    %18 = vector.load %arg10[%c8, %c0_13] : memref<216x256xf32, #tpu.memory_space<vmem>>, vector<4x256xf32>
    tpu.vector_store %arg10[%c8, %c0_13], %17 {strides = array<i32>} : memref<216x256xf32, #tpu.memory_space<vmem>>, vector<4x256xf32>,
    %c1_i32 = arith.constant 1 : i32
    %19 = tpu.dynamic_rotate %1 by %c1_i32 dim 1 : vector<4x256xf32>, i32 -> vector<4x256xf32>
    %c3 = arith.constant 3 : index
    %c0_14 = arith.constant 0 : index
    %20 = vector.load %arg2[%c3, %c0_14] : memref<9x256xf32, #tpu.memory_space<vmem>>, vector<1x256xf32>
    %21 = vector.broadcast %20 : vector<1x256xf32> to vector<4x256xf32>
    %22 = arith.mulf %19, %21 : vector<4x256xf32>
    %c12 = arith.constant 12 : index
    %c0_15 = arith.constant 0 : index
    %23 = vector.load %arg10[%c12, %c0_15] : memref<216x256xf32, #tpu.memory_space<vmem>>, vector<4x256xf32>
    tpu.vector_store %arg10[%c12, %c0_15], %22 {strides = array<i32>} : memref<216x256xf32, #tpu.memory_space<vmem>>, vector<4x256xf32>,
    %c4_16 = arith.constant 4 : index
    %c0_17 = arith.constant 0 : index
    %24 = vector.load %arg2[%c4_16, %c0_17] : memref<9x256xf32, #tpu.memory_space<vmem>>, vector<1x256xf32>
    %25 = vector.broadcast %24 : vector<1x256xf32> to vector<4x256xf32>
    %26 = arith.mulf %1, %25 : vector<4x256xf32>
    %c16 = arith.constant 16 : index
    %c0_18 = arith.constant 0 : index
    %27 = vector.load %arg10[%c16, %c0_18] : memref<216x256xf32, #tpu.memory_space<vmem>>, vector<4x256xf32>
    tpu.vector_store %arg10[%c16, %c0_18], %26 {strides = array<i32>} : memref<216x256xf32, #tpu.memory_space<vmem>>, vector<4x256xf32>,
    %c255_i32 = arith.constant 255 : i32
    %28 = tpu.dynamic_rotate %1 by %c255_i32 dim 1 : vector<4x256xf32>, i32 -> vector<4x256xf32>
    %c5 = arith.constant 5 : index
    %c0_19 = arith.constant 0 : index
    %29 = vector.load %arg2[%c5, %c0_19] : memref<9x256xf32, #tpu.memory_space<vmem>>, vector<1x256xf32>
    %30 = vector.broadcast %29 : vector<1x256xf32> to vector<4x256xf32>
    %31 = arith.mulf %28, %30 : vector<4x256xf32>
    %c20 = arith.constant 20 : index
    %c0_20 = arith.constant 0 : index
    %32 = vector.load %arg10[%c20, %c0_20] : memref<216x256xf32, #tpu.memory_space<vmem>>, vector<4x256xf32>
    tpu.vector_store %arg10[%c20, %c0_20], %31 {strides = array<i32>} : memref<216x256xf32, #tpu.memory_space<vmem>>, vector<4x256xf32>,
    %c241_i32 = arith.constant 241 : i32
    %33 = tpu.dynamic_rotate %1 by %c241_i32 dim 1 : vector<4x256xf32>, i32 -> vector<4x256xf32>
    %c6 = arith.constant 6 : index
    %c0_21 = arith.constant 0 : index
    %34 = vector.load %arg2[%c6, %c0_21] : memref<9x256xf32, #tpu.memory_space<vmem>>, vector<1x256xf32>
    %35 = vector.broadcast %34 : vector<1x256xf32> to vector<4x256xf32>
    %36 = arith.mulf %33, %35 : vector<4x256xf32>
    %c24 = arith.constant 24 : index
    %c0_22 = arith.constant 0 : index
    %37 = vector.load %arg10[%c24, %c0_22] : memref<216x256xf32, #tpu.memory_space<vmem>>, vector<4x256xf32>
    tpu.vector_store %arg10[%c24, %c0_22], %36 {strides = array<i32>} : memref<216x256xf32, #tpu.memory_space<vmem>>, vector<4x256xf32>,
    %c240_i32 = arith.constant 240 : i32
    %38 = tpu.dynamic_rotate %1 by %c240_i32 dim 1 : vector<4x256xf32>, i32 -> vector<4x256xf32>
    %c7 = arith.constant 7 : index
    %c0_23 = arith.constant 0 : index
    %39 = vector.load %arg2[%c7, %c0_23] : memref<9x256xf32, #tpu.memory_space<vmem>>, vector<1x256xf32>
    %40 = vector.broadcast %39 : vector<1x256xf32> to vector<4x256xf32>
    %41 = arith.mulf %38, %40 : vector<4x256xf32>
    %c28 = arith.constant 28 : index
    %c0_24 = arith.constant 0 : index
    %42 = vector.load %arg10[%c28, %c0_24] : memref<216x256xf32, #tpu.memory_space<vmem>>, vector<4x256xf32>
    tpu.vector_store %arg10[%c28, %c0_24], %41 {strides = array<i32>} : memref<216x256xf32, #tpu.memory_space<vmem>>, vector<4x256xf32>,
    %c239_i32 = arith.constant 239 : i32
    %43 = tpu.dynamic_rotate %1 by %c239_i32 dim 1 : vector<4x256xf32>, i32 -> vector<4x256xf32>
    %c8_25 = arith.constant 8 : index
    %c0_26 = arith.constant 0 : index
    %44 = vector.load %arg2[%c8_25, %c0_26] : memref<9x256xf32, #tpu.memory_space<vmem>>, vector<1x256xf32>
    %45 = vector.broadcast %44 : vector<1x256xf32> to vector<4x256xf32>
    %46 = arith.mulf %43, %45 : vector<4x256xf32>
    %c32 = arith.constant 32 : index
    %c0_27 = arith.constant 0 : index
    %47 = vector.load %arg10[%c32, %c0_27] : memref<216x256xf32, #tpu.memory_space<vmem>>, vector<4x256xf32>
    tpu.vector_store %arg10[%c32, %c0_27], %46 {strides = array<i32>} : memref<216x256xf32, #tpu.memory_space<vmem>>, vector<4x256xf32>,
    %c0_28 = arith.constant 0 : index
    %c0_29 = arith.constant 0 : index
    %48 = vector.load %arg10[%c0_28, %c0_29] : memref<216x256xf32, #tpu.memory_space<vmem>>, vector<36x256xf32>
    %cst = arith.constant dense<0.000000e+00> : vector<24x256xf32>
    %49 = tpu.matmul %2, %48, %cst {dimension_numbers = #tpu.dot_dimension_numbers<[1], [0], [0], [1], [0, 0, 1, 1], [], []>} : vector<24x36xf32>, vector<36x256xf32>, vector<24x256xf32> -> vector<24x256xf32>
    %50 = vector.broadcast %3 : vector<24x1xf32> to vector<24x256xf32>
    %51 = arith.addf %49, %50 : vector<24x256xf32>
    %cst_30 = arith.constant 0.000000e+00 : f32
    %52 = vector.broadcast %cst_30 : f32 to vector<4x256xf32>
    %c0_31 = arith.constant 0 : index
    %c0_32 = arith.constant 0 : index
    %c0_33 = arith.constant 0 : index
    %53 = vector.load %arg5[%c0_31, %c0_32, %c0_33] : memref<2x24x216xf32, #tpu.memory_space<vmem>>, vector<1x24x216xf32>
    %54 = vector.shape_cast %53 : vector<1x24x216xf32> to vector<24x216xf32>
    %c0_34 = arith.constant 0 : index
    %c0_35 = arith.constant 0 : index
    %55 = vector.load %arg6[%c0_34, %c0_35] : memref<24x2xf32, #tpu.memory_space<vmem>>, vector<24x1xf32>
    %c17_i32_36 = arith.constant 17 : i32
    %56 = tpu.dynamic_rotate %51 by %c17_i32_36 dim 1 : vector<24x256xf32>, i32 -> vector<24x256xf32>
    %c0_37 = arith.constant 0 : index
    %c0_38 = arith.constant 0 : index
    %57 = vector.load %arg2[%c0_37, %c0_38] : memref<9x256xf32, #tpu.memory_space<vmem>>, vector<1x256xf32>
    %58 = vector.broadcast %57 : vector<1x256xf32> to vector<24x256xf32>
    %59 = arith.mulf %56, %58 : vector<24x256xf32>
    %c0_39 = arith.constant 0 : index
    %c0_40 = arith.constant 0 : index
    %60 = vector.load %arg10[%c0_39, %c0_40] : memref<216x256xf32, #tpu.memory_space<vmem>>, vector<24x256xf32>
    tpu.vector_store %arg10[%c0_39, %c0_40], %59 {strides = array<i32>} : memref<216x256xf32, #tpu.memory_space<vmem>>, vector<24x256xf32>,
    %c16_i32_41 = arith.constant 16 : i32
    %61 = tpu.dynamic_rotate %51 by %c16_i32_41 dim 1 : vector<24x256xf32>, i32 -> vector<24x256xf32>
    %c1_42 = arith.constant 1 : index
    %c0_43 = arith.constant 0 : index
    %62 = vector.load %arg2[%c1_42, %c0_43] : memref<9x256xf32, #tpu.memory_space<vmem>>, vector<1x256xf32>
    %63 = vector.broadcast %62 : vector<1x256xf32> to vector<24x256xf32>
    %64 = arith.mulf %61, %63 : vector<24x256xf32>
    %c24_44 = arith.constant 24 : index
    %c0_45 = arith.constant 0 : index
    %65 = vector.load %arg10[%c24_44, %c0_45] : memref<216x256xf32, #tpu.memory_space<vmem>>, vector<24x256xf32>
    tpu.vector_store %arg10[%c24_44, %c0_45], %64 {strides = array<i32>} : memref<216x256xf32, #tpu.memory_space<vmem>>, vector<24x256xf32>,
    %c15_i32_46 = arith.constant 15 : i32
    %66 = tpu.dynamic_rotate %51 by %c15_i32_46 dim 1 : vector<24x256xf32>, i32 -> vector<24x256xf32>
    %c2_47 = arith.constant 2 : index
    %c0_48 = arith.constant 0 : index
    %67 = vector.load %arg2[%c2_47, %c0_48] : memref<9x256xf32, #tpu.memory_space<vmem>>, vector<1x256xf32>
    %68 = vector.broadcast %67 : vector<1x256xf32> to vector<24x256xf32>
    %69 = arith.mulf %66, %68 : vector<24x256xf32>
    %c48 = arith.constant 48 : index
    %c0_49 = arith.constant 0 : index
    %70 = vector.load %arg10[%c48, %c0_49] : memref<216x256xf32, #tpu.memory_space<vmem>>, vector<24x256xf32>
    tpu.vector_store %arg10[%c48, %c0_49], %69 {strides = array<i32>} : memref<216x256xf32, #tpu.memory_space<vmem>>, vector<24x256xf32>,
    %c1_i32_50 = arith.constant 1 : i32
    %71 = tpu.dynamic_rotate %51 by %c1_i32_50 dim 1 : vector<24x256xf32>, i32 -> vector<24x256xf32>
    %c3_51 = arith.constant 3 : index
    %c0_52 = arith.constant 0 : index
    %72 = vector.load %arg2[%c3_51, %c0_52] : memref<9x256xf32, #tpu.memory_space<vmem>>, vector<1x256xf32>
    %73 = vector.broadcast %72 : vector<1x256xf32> to vector<24x256xf32>
    %74 = arith.mulf %71, %73 : vector<24x256xf32>
    %c72 = arith.constant 72 : index
    %c0_53 = arith.constant 0 : index
    %75 = vector.load %arg10[%c72, %c0_53] : memref<216x256xf32, #tpu.memory_space<vmem>>, vector<24x256xf32>
    tpu.vector_store %arg10[%c72, %c0_53], %74 {strides = array<i32>} : memref<216x256xf32, #tpu.memory_space<vmem>>, vector<24x256xf32>,
    %c4_54 = arith.constant 4 : index
    %c0_55 = arith.constant 0 : index
    %76 = vector.load %arg2[%c4_54, %c0_55] : memref<9x256xf32, #tpu.memory_space<vmem>>, vector<1x256xf32>
    %77 = vector.broadcast %76 : vector<1x256xf32> to vector<24x256xf32>
    %78 = arith.mulf %51, %77 : vector<24x256xf32>
    %c96 = arith.constant 96 : index
    %c0_56 = arith.constant 0 : index
    %79 = vector.load %arg10[%c96, %c0_56] : memref<216x256xf32, #tpu.memory_space<vmem>>, vector<24x256xf32>
    tpu.vector_store %arg10[%c96, %c0_56], %78 {strides = array<i32>} : memref<216x256xf32, #tpu.memory_space<vmem>>, vector<24x256xf32>,
    %c255_i32_57 = arith.constant 255 : i32
    %80 = tpu.dynamic_rotate %51 by %c255_i32_57 dim 1 : vector<24x256xf32>, i32 -> vector<24x256xf32>
    %c5_58 = arith.constant 5 : index
    %c0_59 = arith.constant 0 : index
    %81 = vector.load %arg2[%c5_58, %c0_59] : memref<9x256xf32, #tpu.memory_space<vmem>>, vector<1x256xf32>
    %82 = vector.broadcast %81 : vector<1x256xf32> to vector<24x256xf32>
    %83 = arith.mulf %80, %82 : vector<24x256xf32>
    %c120 = arith.constant 120 : index
    %c0_60 = arith.constant 0 : index
    %84 = vector.load %arg10[%c120, %c0_60] : memref<216x256xf32, #tpu.memory_space<vmem>>, vector<24x256xf32>
    tpu.vector_store %arg10[%c120, %c0_60], %83 {strides = array<i32>} : memref<216x256xf32, #tpu.memory_space<vmem>>, vector<24x256xf32>,
    %c241_i32_61 = arith.constant 241 : i32
    %85 = tpu.dynamic_rotate %51 by %c241_i32_61 dim 1 : vector<24x256xf32>, i32 -> vector<24x256xf32>
    %c6_62 = arith.constant 6 : index
    %c0_63 = arith.constant 0 : index
    %86 = vector.load %arg2[%c6_62, %c0_63] : memref<9x256xf32, #tpu.memory_space<vmem>>, vector<1x256xf32>
    %87 = vector.broadcast %86 : vector<1x256xf32> to vector<24x256xf32>
    %88 = arith.mulf %85, %87 : vector<24x256xf32>
    %c144 = arith.constant 144 : index
    %c0_64 = arith.constant 0 : index
    %89 = vector.load %arg10[%c144, %c0_64] : memref<216x256xf32, #tpu.memory_space<vmem>>, vector<24x256xf32>
    tpu.vector_store %arg10[%c144, %c0_64], %88 {strides = array<i32>} : memref<216x256xf32, #tpu.memory_space<vmem>>, vector<24x256xf32>,
    %c240_i32_65 = arith.constant 240 : i32
    %90 = tpu.dynamic_rotate %51 by %c240_i32_65 dim 1 : vector<24x256xf32>, i32 -> vector<24x256xf32>
    %c7_66 = arith.constant 7 : index
    %c0_67 = arith.constant 0 : index
    %91 = vector.load %arg2[%c7_66, %c0_67] : memref<9x256xf32, #tpu.memory_space<vmem>>, vector<1x256xf32>
    %92 = vector.broadcast %91 : vector<1x256xf32> to vector<24x256xf32>
    %93 = arith.mulf %90, %92 : vector<24x256xf32>
    %c168 = arith.constant 168 : index
    %c0_68 = arith.constant 0 : index
    %94 = vector.load %arg10[%c168, %c0_68] : memref<216x256xf32, #tpu.memory_space<vmem>>, vector<24x256xf32>
    tpu.vector_store %arg10[%c168, %c0_68], %93 {strides = array<i32>} : memref<216x256xf32, #tpu.memory_space<vmem>>, vector<24x256xf32>,
    %c239_i32_69 = arith.constant 239 : i32
    %95 = tpu.dynamic_rotate %51 by %c239_i32_69 dim 1 : vector<24x256xf32>, i32 -> vector<24x256xf32>
    %c8_70 = arith.constant 8 : index
    %c0_71 = arith.constant 0 : index
    %96 = vector.load %arg2[%c8_70, %c0_71] : memref<9x256xf32, #tpu.memory_space<vmem>>, vector<1x256xf32>
    %97 = vector.broadcast %96 : vector<1x256xf32> to vector<24x256xf32>
    %98 = arith.mulf %95, %97 : vector<24x256xf32>
    %c192 = arith.constant 192 : index
    %c0_72 = arith.constant 0 : index
    %99 = vector.load %arg10[%c192, %c0_72] : memref<216x256xf32, #tpu.memory_space<vmem>>, vector<24x256xf32>
    tpu.vector_store %arg10[%c192, %c0_72], %98 {strides = array<i32>} : memref<216x256xf32, #tpu.memory_space<vmem>>, vector<24x256xf32>,
    %c0_73 = arith.constant 0 : index
    %c0_74 = arith.constant 0 : index
    %100 = vector.load %arg10[%c0_73, %c0_74] : memref<216x256xf32, #tpu.memory_space<vmem>>, vector<216x256xf32>
    %cst_75 = arith.constant dense<0.000000e+00> : vector<24x256xf32>
    %101 = tpu.matmul %54, %100, %cst_75 {dimension_numbers = #tpu.dot_dimension_numbers<[1], [0], [0], [1], [0, 0, 1, 1], [], []>} : vector<24x216xf32>, vector<216x256xf32>, vector<24x256xf32> -> vector<24x256xf32>
    %102 = vector.broadcast %55 : vector<24x1xf32> to vector<24x256xf32>
    %103 = arith.addf %101, %102 : vector<24x256xf32>
    %104 = vector.extract_strided_slice %103 {offsets = [0, 0], sizes = [4, 256], strides = [1, 1]} : vector<24x256xf32> to vector<4x256xf32>
    %105 = vector.extract_strided_slice %103 {offsets = [4, 0], sizes = [4, 256], strides = [1, 1]} : vector<24x256xf32> to vector<4x256xf32>
    %106 = vector.extract_strided_slice %103 {offsets = [8, 0], sizes = [4, 256], strides = [1, 1]} : vector<24x256xf32> to vector<4x256xf32>
    %107 = vector.extract_strided_slice %103 {offsets = [12, 0], sizes = [4, 256], strides = [1, 1]} : vector<24x256xf32> to vector<4x256xf32>
    %108 = vector.extract_strided_slice %103 {offsets = [16, 0], sizes = [4, 256], strides = [1, 1]} : vector<24x256xf32> to vector<4x256xf32>
    %109 = vector.extract_strided_slice %103 {offsets = [20, 0], sizes = [4, 256], strides = [1, 1]} : vector<24x256xf32> to vector<4x256xf32>
    %110 = arith.mulf %106, %104 : vector<4x256xf32>
    %111 = arith.addf %52, %110 : vector<4x256xf32>
    %112 = arith.mulf %107, %105 : vector<4x256xf32>
    %cst_76 = arith.constant 1.000000e+00 : f32
    %113 = vector.broadcast %cst_76 : f32 to vector<4x256xf32>
    %114 = arith.addf %113, %112 : vector<4x256xf32>
    %115 = arith.mulf %111, %114 : vector<4x256xf32>
    %116 = arith.mulf %108, %104 : vector<4x256xf32>
    %117 = arith.addf %115, %116 : vector<4x256xf32>
    %118 = arith.mulf %109, %105 : vector<4x256xf32>
    %cst_77 = arith.constant 1.000000e+00 : f32
    %119 = vector.broadcast %cst_77 : f32 to vector<4x256xf32>
    %120 = arith.addf %119, %118 : vector<4x256xf32>
    %121 = arith.mulf %117, %120 : vector<4x256xf32>
    %c1_78 = arith.constant 1 : index
    %c0_79 = arith.constant 0 : index
    %c0_80 = arith.constant 0 : index
    %122 = vector.load %arg5[%c1_78, %c0_79, %c0_80] : memref<2x24x216xf32, #tpu.memory_space<vmem>>, vector<1x24x216xf32>
    %123 = vector.shape_cast %122 : vector<1x24x216xf32> to vector<24x216xf32>
    %c0_81 = arith.constant 0 : index
    %c1_82 = arith.constant 1 : index
    %124 = vector.load %arg6[%c0_81, %c1_82] : memref<24x2xf32, #tpu.memory_space<vmem>>, vector<24x1xf32>
    %c17_i32_83 = arith.constant 17 : i32
    %125 = tpu.dynamic_rotate %103 by %c17_i32_83 dim 1 : vector<24x256xf32>, i32 -> vector<24x256xf32>
    %c0_84 = arith.constant 0 : index
    %c0_85 = arith.constant 0 : index
    %126 = vector.load %arg2[%c0_84, %c0_85] : memref<9x256xf32, #tpu.memory_space<vmem>>, vector<1x256xf32>
    %127 = vector.broadcast %126 : vector<1x256xf32> to vector<24x256xf32>
    %128 = arith.mulf %125, %127 : vector<24x256xf32>
    %c0_86 = arith.constant 0 : index
    %c0_87 = arith.constant 0 : index
    %129 = vector.load %arg10[%c0_86, %c0_87] : memref<216x256xf32, #tpu.memory_space<vmem>>, vector<24x256xf32>
    tpu.vector_store %arg10[%c0_86, %c0_87], %128 {strides = array<i32>} : memref<216x256xf32, #tpu.memory_space<vmem>>, vector<24x256xf32>,
    %c16_i32_88 = arith.constant 16 : i32
    %130 = tpu.dynamic_rotate %103 by %c16_i32_88 dim 1 : vector<24x256xf32>, i32 -> vector<24x256xf32>
    %c1_89 = arith.constant 1 : index
    %c0_90 = arith.constant 0 : index
    %131 = vector.load %arg2[%c1_89, %c0_90] : memref<9x256xf32, #tpu.memory_space<vmem>>, vector<1x256xf32>
    %132 = vector.broadcast %131 : vector<1x256xf32> to vector<24x256xf32>
    %133 = arith.mulf %130, %132 : vector<24x256xf32>
    %c24_91 = arith.constant 24 : index
    %c0_92 = arith.constant 0 : index
    %134 = vector.load %arg10[%c24_91, %c0_92] : memref<216x256xf32, #tpu.memory_space<vmem>>, vector<24x256xf32>
    tpu.vector_store %arg10[%c24_91, %c0_92], %133 {strides = array<i32>} : memref<216x256xf32, #tpu.memory_space<vmem>>, vector<24x256xf32>,
    %c15_i32_93 = arith.constant 15 : i32
    %135 = tpu.dynamic_rotate %103 by %c15_i32_93 dim 1 : vector<24x256xf32>, i32 -> vector<24x256xf32>
    %c2_94 = arith.constant 2 : index
    %c0_95 = arith.constant 0 : index
    %136 = vector.load %arg2[%c2_94, %c0_95] : memref<9x256xf32, #tpu.memory_space<vmem>>, vector<1x256xf32>
    %137 = vector.broadcast %136 : vector<1x256xf32> to vector<24x256xf32>
    %138 = arith.mulf %135, %137 : vector<24x256xf32>
    %c48_96 = arith.constant 48 : index
    %c0_97 = arith.constant 0 : index
    %139 = vector.load %arg10[%c48_96, %c0_97] : memref<216x256xf32, #tpu.memory_space<vmem>>, vector<24x256xf32>
    tpu.vector_store %arg10[%c48_96, %c0_97], %138 {strides = array<i32>} : memref<216x256xf32, #tpu.memory_space<vmem>>, vector<24x256xf32>,
    %c1_i32_98 = arith.constant 1 : i32
    %140 = tpu.dynamic_rotate %103 by %c1_i32_98 dim 1 : vector<24x256xf32>, i32 -> vector<24x256xf32>
    %c3_99 = arith.constant 3 : index
    %c0_100 = arith.constant 0 : index
    %141 = vector.load %arg2[%c3_99, %c0_100] : memref<9x256xf32, #tpu.memory_space<vmem>>, vector<1x256xf32>
    %142 = vector.broadcast %141 : vector<1x256xf32> to vector<24x256xf32>
    %143 = arith.mulf %140, %142 : vector<24x256xf32>
    %c72_101 = arith.constant 72 : index
    %c0_102 = arith.constant 0 : index
    %144 = vector.load %arg10[%c72_101, %c0_102] : memref<216x256xf32, #tpu.memory_space<vmem>>, vector<24x256xf32>
    tpu.vector_store %arg10[%c72_101, %c0_102], %143 {strides = array<i32>} : memref<216x256xf32, #tpu.memory_space<vmem>>, vector<24x256xf32>,
    %c4_103 = arith.constant 4 : index
    %c0_104 = arith.constant 0 : index
    %145 = vector.load %arg2[%c4_103, %c0_104] : memref<9x256xf32, #tpu.memory_space<vmem>>, vector<1x256xf32>
    %146 = vector.broadcast %145 : vector<1x256xf32> to vector<24x256xf32>
    %147 = arith.mulf %103, %146 : vector<24x256xf32>
    %c96_105 = arith.constant 96 : index
    %c0_106 = arith.constant 0 : index
    %148 = vector.load %arg10[%c96_105, %c0_106] : memref<216x256xf32, #tpu.memory_space<vmem>>, vector<24x256xf32>
    tpu.vector_store %arg10[%c96_105, %c0_106], %147 {strides = array<i32>} : memref<216x256xf32, #tpu.memory_space<vmem>>, vector<24x256xf32>,
    %c255_i32_107 = arith.constant 255 : i32
    %149 = tpu.dynamic_rotate %103 by %c255_i32_107 dim 1 : vector<24x256xf32>, i32 -> vector<24x256xf32>
    %c5_108 = arith.constant 5 : index
    %c0_109 = arith.constant 0 : index
    %150 = vector.load %arg2[%c5_108, %c0_109] : memref<9x256xf32, #tpu.memory_space<vmem>>, vector<1x256xf32>
    %151 = vector.broadcast %150 : vector<1x256xf32> to vector<24x256xf32>
    %152 = arith.mulf %149, %151 : vector<24x256xf32>
    %c120_110 = arith.constant 120 : index
    %c0_111 = arith.constant 0 : index
    %153 = vector.load %arg10[%c120_110, %c0_111] : memref<216x256xf32, #tpu.memory_space<vmem>>, vector<24x256xf32>
    tpu.vector_store %arg10[%c120_110, %c0_111], %152 {strides = array<i32>} : memref<216x256xf32, #tpu.memory_space<vmem>>, vector<24x256xf32>,
    %c241_i32_112 = arith.constant 241 : i32
    %154 = tpu.dynamic_rotate %103 by %c241_i32_112 dim 1 : vector<24x256xf32>, i32 -> vector<24x256xf32>
    %c6_113 = arith.constant 6 : index
    %c0_114 = arith.constant 0 : index
    %155 = vector.load %arg2[%c6_113, %c0_114] : memref<9x256xf32, #tpu.memory_space<vmem>>, vector<1x256xf32>
    %156 = vector.broadcast %155 : vector<1x256xf32> to vector<24x256xf32>
    %157 = arith.mulf %154, %156 : vector<24x256xf32>
    %c144_115 = arith.constant 144 : index
    %c0_116 = arith.constant 0 : index
    %158 = vector.load %arg10[%c144_115, %c0_116] : memref<216x256xf32, #tpu.memory_space<vmem>>, vector<24x256xf32>
    tpu.vector_store %arg10[%c144_115, %c0_116], %157 {strides = array<i32>} : memref<216x256xf32, #tpu.memory_space<vmem>>, vector<24x256xf32>,
    %c240_i32_117 = arith.constant 240 : i32
    %159 = tpu.dynamic_rotate %103 by %c240_i32_117 dim 1 : vector<24x256xf32>, i32 -> vector<24x256xf32>
    %c7_118 = arith.constant 7 : index
    %c0_119 = arith.constant 0 : index
    %160 = vector.load %arg2[%c7_118, %c0_119] : memref<9x256xf32, #tpu.memory_space<vmem>>, vector<1x256xf32>
    %161 = vector.broadcast %160 : vector<1x256xf32> to vector<24x256xf32>
    %162 = arith.mulf %159, %161 : vector<24x256xf32>
    %c168_120 = arith.constant 168 : index
    %c0_121 = arith.constant 0 : index
    %163 = vector.load %arg10[%c168_120, %c0_121] : memref<216x256xf32, #tpu.memory_space<vmem>>, vector<24x256xf32>
    tpu.vector_store %arg10[%c168_120, %c0_121], %162 {strides = array<i32>} : memref<216x256xf32, #tpu.memory_space<vmem>>, vector<24x256xf32>,
    %c239_i32_122 = arith.constant 239 : i32
    %164 = tpu.dynamic_rotate %103 by %c239_i32_122 dim 1 : vector<24x256xf32>, i32 -> vector<24x256xf32>
    %c8_123 = arith.constant 8 : index
    %c0_124 = arith.constant 0 : index
    %165 = vector.load %arg2[%c8_123, %c0_124] : memref<9x256xf32, #tpu.memory_space<vmem>>, vector<1x256xf32>
    %166 = vector.broadcast %165 : vector<1x256xf32> to vector<24x256xf32>
    %167 = arith.mulf %164, %166 : vector<24x256xf32>
    %c192_125 = arith.constant 192 : index
    %c0_126 = arith.constant 0 : index
    %168 = vector.load %arg10[%c192_125, %c0_126] : memref<216x256xf32, #tpu.memory_space<vmem>>, vector<24x256xf32>
    tpu.vector_store %arg10[%c192_125, %c0_126], %167 {strides = array<i32>} : memref<216x256xf32, #tpu.memory_space<vmem>>, vector<24x256xf32>,
    %c0_127 = arith.constant 0 : index
    %c0_128 = arith.constant 0 : index
    %169 = vector.load %arg10[%c0_127, %c0_128] : memref<216x256xf32, #tpu.memory_space<vmem>>, vector<216x256xf32>
    %cst_129 = arith.constant dense<0.000000e+00> : vector<24x256xf32>
    %170 = tpu.matmul %123, %169, %cst_129 {dimension_numbers = #tpu.dot_dimension_numbers<[1], [0], [0], [1], [0, 0, 1, 1], [], []>} : vector<24x216xf32>, vector<216x256xf32>, vector<24x256xf32> -> vector<24x256xf32>
    %171 = vector.broadcast %124 : vector<24x1xf32> to vector<24x256xf32>
    %172 = arith.addf %170, %171 : vector<24x256xf32>
    %173 = vector.extract_strided_slice %172 {offsets = [0, 0], sizes = [4, 256], strides = [1, 1]} : vector<24x256xf32> to vector<4x256xf32>
    %174 = vector.extract_strided_slice %172 {offsets = [4, 0], sizes = [4, 256], strides = [1, 1]} : vector<24x256xf32> to vector<4x256xf32>
    %175 = vector.extract_strided_slice %172 {offsets = [8, 0], sizes = [4, 256], strides = [1, 1]} : vector<24x256xf32> to vector<4x256xf32>
    %176 = vector.extract_strided_slice %172 {offsets = [12, 0], sizes = [4, 256], strides = [1, 1]} : vector<24x256xf32> to vector<4x256xf32>
    %177 = vector.extract_strided_slice %172 {offsets = [16, 0], sizes = [4, 256], strides = [1, 1]} : vector<24x256xf32> to vector<4x256xf32>
    %178 = vector.extract_strided_slice %172 {offsets = [20, 0], sizes = [4, 256], strides = [1, 1]} : vector<24x256xf32> to vector<4x256xf32>
    %179 = arith.mulf %175, %173 : vector<4x256xf32>
    %180 = arith.addf %121, %179 : vector<4x256xf32>
    %181 = arith.mulf %176, %174 : vector<4x256xf32>
    %cst_130 = arith.constant 1.000000e+00 : f32
    %182 = vector.broadcast %cst_130 : f32 to vector<4x256xf32>
    %183 = arith.addf %182, %181 : vector<4x256xf32>
    %184 = arith.mulf %180, %183 : vector<4x256xf32>
    %185 = arith.mulf %177, %173 : vector<4x256xf32>
    %186 = arith.addf %184, %185 : vector<4x256xf32>
    %187 = arith.mulf %178, %174 : vector<4x256xf32>
    %cst_131 = arith.constant 1.000000e+00 : f32
    %188 = vector.broadcast %cst_131 : f32 to vector<4x256xf32>
    %189 = arith.addf %188, %187 : vector<4x256xf32>
    %190 = arith.mulf %186, %189 : vector<4x256xf32>
    %c0_132 = arith.constant 0 : index
    %c0_133 = arith.constant 0 : index
    %191 = vector.load %arg7[%c0_132, %c0_133] : memref<3x36xf32, #tpu.memory_space<vmem>>, vector<3x36xf32>
    %c0_134 = arith.constant 0 : index
    %c0_135 = arith.constant 0 : index
    %192 = vector.load %arg8[%c0_134, %c0_135] : memref<3x1xf32, #tpu.memory_space<vmem>>, vector<3x1xf32>
    %c17_i32_136 = arith.constant 17 : i32
    %193 = tpu.dynamic_rotate %190 by %c17_i32_136 dim 1 : vector<4x256xf32>, i32 -> vector<4x256xf32>
    %c0_137 = arith.constant 0 : index
    %c0_138 = arith.constant 0 : index
    %194 = vector.load %arg2[%c0_137, %c0_138] : memref<9x256xf32, #tpu.memory_space<vmem>>, vector<1x256xf32>
    %195 = vector.broadcast %194 : vector<1x256xf32> to vector<4x256xf32>
    %196 = arith.mulf %193, %195 : vector<4x256xf32>
    %c0_139 = arith.constant 0 : index
    %c0_140 = arith.constant 0 : index
    %197 = vector.load %arg10[%c0_139, %c0_140] : memref<216x256xf32, #tpu.memory_space<vmem>>, vector<4x256xf32>
    tpu.vector_store %arg10[%c0_139, %c0_140], %196 {strides = array<i32>} : memref<216x256xf32, #tpu.memory_space<vmem>>, vector<4x256xf32>,
    %c16_i32_141 = arith.constant 16 : i32
    %198 = tpu.dynamic_rotate %190 by %c16_i32_141 dim 1 : vector<4x256xf32>, i32 -> vector<4x256xf32>
    %c1_142 = arith.constant 1 : index
    %c0_143 = arith.constant 0 : index
    %199 = vector.load %arg2[%c1_142, %c0_143] : memref<9x256xf32, #tpu.memory_space<vmem>>, vector<1x256xf32>
    %200 = vector.broadcast %199 : vector<1x256xf32> to vector<4x256xf32>
    %201 = arith.mulf %198, %200 : vector<4x256xf32>
    %c4_144 = arith.constant 4 : index
    %c0_145 = arith.constant 0 : index
    %202 = vector.load %arg10[%c4_144, %c0_145] : memref<216x256xf32, #tpu.memory_space<vmem>>, vector<4x256xf32>
    tpu.vector_store %arg10[%c4_144, %c0_145], %201 {strides = array<i32>} : memref<216x256xf32, #tpu.memory_space<vmem>>, vector<4x256xf32>,
    %c15_i32_146 = arith.constant 15 : i32
    %203 = tpu.dynamic_rotate %190 by %c15_i32_146 dim 1 : vector<4x256xf32>, i32 -> vector<4x256xf32>
    %c2_147 = arith.constant 2 : index
    %c0_148 = arith.constant 0 : index
    %204 = vector.load %arg2[%c2_147, %c0_148] : memref<9x256xf32, #tpu.memory_space<vmem>>, vector<1x256xf32>
    %205 = vector.broadcast %204 : vector<1x256xf32> to vector<4x256xf32>
    %206 = arith.mulf %203, %205 : vector<4x256xf32>
    %c8_149 = arith.constant 8 : index
    %c0_150 = arith.constant 0 : index
    %207 = vector.load %arg10[%c8_149, %c0_150] : memref<216x256xf32, #tpu.memory_space<vmem>>, vector<4x256xf32>
    tpu.vector_store %arg10[%c8_149, %c0_150], %206 {strides = array<i32>} : memref<216x256xf32, #tpu.memory_space<vmem>>, vector<4x256xf32>,
    %c1_i32_151 = arith.constant 1 : i32
    %208 = tpu.dynamic_rotate %190 by %c1_i32_151 dim 1 : vector<4x256xf32>, i32 -> vector<4x256xf32>
    %c3_152 = arith.constant 3 : index
    %c0_153 = arith.constant 0 : index
    %209 = vector.load %arg2[%c3_152, %c0_153] : memref<9x256xf32, #tpu.memory_space<vmem>>, vector<1x256xf32>
    %210 = vector.broadcast %209 : vector<1x256xf32> to vector<4x256xf32>
    %211 = arith.mulf %208, %210 : vector<4x256xf32>
    %c12_154 = arith.constant 12 : index
    %c0_155 = arith.constant 0 : index
    %212 = vector.load %arg10[%c12_154, %c0_155] : memref<216x256xf32, #tpu.memory_space<vmem>>, vector<4x256xf32>
    tpu.vector_store %arg10[%c12_154, %c0_155], %211 {strides = array<i32>} : memref<216x256xf32, #tpu.memory_space<vmem>>, vector<4x256xf32>,
    %c4_156 = arith.constant 4 : index
    %c0_157 = arith.constant 0 : index
    %213 = vector.load %arg2[%c4_156, %c0_157] : memref<9x256xf32, #tpu.memory_space<vmem>>, vector<1x256xf32>
    %214 = vector.broadcast %213 : vector<1x256xf32> to vector<4x256xf32>
    %215 = arith.mulf %190, %214 : vector<4x256xf32>
    %c16_158 = arith.constant 16 : index
    %c0_159 = arith.constant 0 : index
    %216 = vector.load %arg10[%c16_158, %c0_159] : memref<216x256xf32, #tpu.memory_space<vmem>>, vector<4x256xf32>
    tpu.vector_store %arg10[%c16_158, %c0_159], %215 {strides = array<i32>} : memref<216x256xf32, #tpu.memory_space<vmem>>, vector<4x256xf32>,
    %c255_i32_160 = arith.constant 255 : i32
    %217 = tpu.dynamic_rotate %190 by %c255_i32_160 dim 1 : vector<4x256xf32>, i32 -> vector<4x256xf32>
    %c5_161 = arith.constant 5 : index
    %c0_162 = arith.constant 0 : index
    %218 = vector.load %arg2[%c5_161, %c0_162] : memref<9x256xf32, #tpu.memory_space<vmem>>, vector<1x256xf32>
    %219 = vector.broadcast %218 : vector<1x256xf32> to vector<4x256xf32>
    %220 = arith.mulf %217, %219 : vector<4x256xf32>
    %c20_163 = arith.constant 20 : index
    %c0_164 = arith.constant 0 : index
    %221 = vector.load %arg10[%c20_163, %c0_164] : memref<216x256xf32, #tpu.memory_space<vmem>>, vector<4x256xf32>
    tpu.vector_store %arg10[%c20_163, %c0_164], %220 {strides = array<i32>} : memref<216x256xf32, #tpu.memory_space<vmem>>, vector<4x256xf32>,
    %c241_i32_165 = arith.constant 241 : i32
    %222 = tpu.dynamic_rotate %190 by %c241_i32_165 dim 1 : vector<4x256xf32>, i32 -> vector<4x256xf32>
    %c6_166 = arith.constant 6 : index
    %c0_167 = arith.constant 0 : index
    %223 = vector.load %arg2[%c6_166, %c0_167] : memref<9x256xf32, #tpu.memory_space<vmem>>, vector<1x256xf32>
    %224 = vector.broadcast %223 : vector<1x256xf32> to vector<4x256xf32>
    %225 = arith.mulf %222, %224 : vector<4x256xf32>
    %c24_168 = arith.constant 24 : index
    %c0_169 = arith.constant 0 : index
    %226 = vector.load %arg10[%c24_168, %c0_169] : memref<216x256xf32, #tpu.memory_space<vmem>>, vector<4x256xf32>
    tpu.vector_store %arg10[%c24_168, %c0_169], %225 {strides = array<i32>} : memref<216x256xf32, #tpu.memory_space<vmem>>, vector<4x256xf32>,
    %c240_i32_170 = arith.constant 240 : i32
    %227 = tpu.dynamic_rotate %190 by %c240_i32_170 dim 1 : vector<4x256xf32>, i32 -> vector<4x256xf32>
    %c7_171 = arith.constant 7 : index
    %c0_172 = arith.constant 0 : index
    %228 = vector.load %arg2[%c7_171, %c0_172] : memref<9x256xf32, #tpu.memory_space<vmem>>, vector<1x256xf32>
    %229 = vector.broadcast %228 : vector<1x256xf32> to vector<4x256xf32>
    %230 = arith.mulf %227, %229 : vector<4x256xf32>
    %c28_173 = arith.constant 28 : index
    %c0_174 = arith.constant 0 : index
    %231 = vector.load %arg10[%c28_173, %c0_174] : memref<216x256xf32, #tpu.memory_space<vmem>>, vector<4x256xf32>
    tpu.vector_store %arg10[%c28_173, %c0_174], %230 {strides = array<i32>} : memref<216x256xf32, #tpu.memory_space<vmem>>, vector<4x256xf32>,
    %c239_i32_175 = arith.constant 239 : i32
    %232 = tpu.dynamic_rotate %190 by %c239_i32_175 dim 1 : vector<4x256xf32>, i32 -> vector<4x256xf32>
    %c8_176 = arith.constant 8 : index
    %c0_177 = arith.constant 0 : index
    %233 = vector.load %arg2[%c8_176, %c0_177] : memref<9x256xf32, #tpu.memory_space<vmem>>, vector<1x256xf32>
    %234 = vector.broadcast %233 : vector<1x256xf32> to vector<4x256xf32>
    %235 = arith.mulf %232, %234 : vector<4x256xf32>
    %c32_178 = arith.constant 32 : index
    %c0_179 = arith.constant 0 : index
    %236 = vector.load %arg10[%c32_178, %c0_179] : memref<216x256xf32, #tpu.memory_space<vmem>>, vector<4x256xf32>
    tpu.vector_store %arg10[%c32_178, %c0_179], %235 {strides = array<i32>} : memref<216x256xf32, #tpu.memory_space<vmem>>, vector<4x256xf32>,
    %c0_180 = arith.constant 0 : index
    %c0_181 = arith.constant 0 : index
    %237 = vector.load %arg10[%c0_180, %c0_181] : memref<216x256xf32, #tpu.memory_space<vmem>>, vector<36x256xf32>
    %cst_182 = arith.constant dense<0.000000e+00> : vector<3x256xf32>
    %238 = tpu.matmul %191, %237, %cst_182 {dimension_numbers = #tpu.dot_dimension_numbers<[1], [0], [0], [1], [0, 0, 1, 1], [], []>} : vector<3x36xf32>, vector<36x256xf32>, vector<3x256xf32> -> vector<3x256xf32>
    %239 = vector.broadcast %192 : vector<3x1xf32> to vector<3x256xf32>
    %240 = arith.addf %238, %239 : vector<3x256xf32>
    %c0_183 = arith.constant 0 : index
    %c0_184 = arith.constant 0 : index
    %c0_185 = arith.constant 0 : index
    %241 = vector.load %arg9[%c0_183, %c0_184, %c0_185] : memref<1x3x256xf32, #tpu.memory_space<vmem>>, vector<1x3x256xf32>
    %242 = vector.shape_cast %241 : vector<1x3x256xf32> to vector<3x256xf32>
    %243 = vector.shape_cast %240 : vector<3x256xf32> to vector<1x3x256xf32>
    tpu.vector_store %arg9[%c0_183, %c0_184, %c0_185], %243 {strides = array<i32>} : memref<1x3x256xf32, #tpu.memory_space<vmem>>, vector<1x3x256xf32>,
    return
  }
  func.func @transform_0(%arg0: i32) -> (i32, i32, i32) {
    %c0_i32 = arith.constant 0 : i32
    %c0_i32_0 = arith.constant 0 : i32
    %c0_i32_1 = arith.constant 0 : i32
    return %arg0, %c0_i32, %c0_i32_0 : i32, i32, i32
  }
  func.func @transform_1(%arg0: i32) -> (i32, i32) {
    %c0_i32 = arith.constant 0 : i32
    %c0_i32_0 = arith.constant 0 : i32
    %c0_i32_1 = arith.constant 0 : i32
    return %c0_i32, %c0_i32_0 : i32, i32
  }
  func.func @transform_2(%arg0: i32) -> (i32, i32) {
    %c0_i32 = arith.constant 0 : i32
    %c0_i32_0 = arith.constant 0 : i32
    %c0_i32_1 = arith.constant 0 : i32
    return %c0_i32, %c0_i32_0 : i32, i32
  }
  func.func @transform_3(%arg0: i32) -> (i32, i32) {
    %c0_i32 = arith.constant 0 : i32
    %c0_i32_0 = arith.constant 0 : i32
    %c0_i32_1 = arith.constant 0 : i32
    return %c0_i32, %c0_i32_0 : i32, i32
  }
  func.func @transform_4(%arg0: i32) -> (i32, i32, i32) {
    %c0_i32 = arith.constant 0 : i32
    %c0_i32_0 = arith.constant 0 : i32
    %c0_i32_1 = arith.constant 0 : i32
    %c0_i32_2 = arith.constant 0 : i32
    return %c0_i32, %c0_i32_0, %c0_i32_1 : i32, i32, i32
  }
  func.func @transform_5(%arg0: i32) -> (i32, i32) {
    %c0_i32 = arith.constant 0 : i32
    %c0_i32_0 = arith.constant 0 : i32
    %c0_i32_1 = arith.constant 0 : i32
    return %c0_i32, %c0_i32_0 : i32, i32
  }
  func.func @transform_6(%arg0: i32) -> (i32, i32) {
    %c0_i32 = arith.constant 0 : i32
    %c0_i32_0 = arith.constant 0 : i32
    %c0_i32_1 = arith.constant 0 : i32
    return %c0_i32, %c0_i32_0 : i32, i32
  }
  func.func @transform_7(%arg0: i32) -> (i32, i32) {
    %c0_i32 = arith.constant 0 : i32
    %c0_i32_0 = arith.constant 0 : i32
    %c0_i32_1 = arith.constant 0 : i32
    return %c0_i32, %c0_i32_0 : i32, i32
  }
  func.func @transform_8(%arg0: i32) -> (i32, i32, i32) {
    %c0_i32 = arith.constant 0 : i32
    %c0_i32_0 = arith.constant 0 : i32
    %c0_i32_1 = arith.constant 0 : i32
    return %arg0, %c0_i32, %c0_i32_0 : i32, i32, i32
  }
}

</mosaic_0001>

<bundles_post_ra>
// kernel: leveled_hyp_tube_forward.1
= control target key start
LH: loop header
LB: loop body
LE: loop exit
PB: predicated region body
PF: predicated region fallthrough
CT: control target
= control target key end

     0   :  { %s2139_s27 = smov 0   ;;  %s3164_s0 = inlined_call_operand.vmem [shape: f32[2,4,256], index: 0, kind: input, shape index: {}]   ;;  %s3165_s1 = inlined_call_operand.vmem [shape: f32[9,256], index: 1, kind: input, shape index: {}]   ;;  %s3166_s2 = inlined_call_operand.vmem [shape: f32[24,36], index: 2, kind: input, shape index: {}]   ;;  %s3167_s3 = inlined_call_operand.vmem [shape: f32[24,1], index: 3, kind: input, shape index: {}]   ;;  %s3168_s4 = inlined_call_operand.vmem [shape: f32[2,24,216], index: 4, kind: input, shape index: {}]   ;;  %s3169_s5 = inlined_call_operand.vmem [shape: f32[24,2], index: 5, kind: input, shape index: {}]   ;;  %s3170_s6 = inlined_call_operand.vmem [shape: f32[3,36], index: 6, kind: input, shape index: {}]   ;;  %s3171_s7 = inlined_call_operand.vmem [shape: f32[3,1], index: 7, kind: input, shape index: {}]   ;;  %s3172_s8 = inlined_call_operand.vmem [shape: f32[2,3,256], index: 8, kind: output, shape index: {}]  }
   0x1 LB: > { %s1975_s28 = sadd.s32 4294967295, %s2082_s27   ;;  %p1979_p0 = scmp.ge.s32.totalorder %s2082_s27, 1  ;;  %s2082_s27 = sphi %s2139_s27, %s18_s27  }
   0x2   : > { %p262_p1 = scmp.lt.s32.totalorder %s2082_s27, 3 }
   0x4   : > { %p263_p2 = pnand %p1979_p0, %p262_p1 }
   0x6   : > { %266 = sbr.rel (%p263_p2) target bundleno = 1430 (0x596), region = 52 }
   0xb   : > { %p296_p3 = scmp.lt.s32.totalorder %s1975_s28, 1  ;;  %v1987_v3 = vld [vmem:[%s3165_s1 + $0x4] ss:$8 sm:$0x3]  ;;  %s2084_s13 = smov 16   ;;  %vm425_vm0 = vcmask 1043456   ;;  %v323_v26 = vlaneseq }
   0xc   : > { %v423_v6 = vperm.slane %v1987_v3, 1  ;;  %v422_v7 = vperm.slane %v1987_v3, 0  ;;  %s2085_s14 = smov 15   ;;  %s2086_s15 = smov 1   ;;  %vm566_vm9 = vcmask 293888   ;;  %vm1018_vm10 = vcmask 719872  }
   0xd   : > { %s3183_s28 = smov (!%p296_p3, %s1975_s28), 1  ;;  %s2087_s16 = smov 127   ;;  %v2175_v27 = vand.u32 127, %v323_v26  ;;  %v1984_v28 = vld [vmem:[%s3165_s1 + $0x1] ss:$8 sm:$0x3] }
   0xe   : > { %s2048_s29 = sshll.u32 %s3183_s28, 3  ;;  %v424_v8 = vrot.slane %v423_v6, 4  ;;  %s2088_s17 = smov 113   ;;  %v353_v29 = vperm.slane %v1984_v28, 0  ;;  %v354_v30 = vperm.slane %v1984_v28, 1 }
   0xf   : > { %s300_s10 = scalar_lea.vmem %s3164_s0, %s2048_s29  ;;  %s2089_s18 = smov 112   ;;  %vm347_vm1 = vcmp.lt.s32.totalorder %v2175_v27, 16  ;;  %v1986_v41 = vld [vmem:[%s3165_s1 + $0x3] ss:$8 sm:$0x3]  ;;  %vm399_vm2 = vcmp.lt.s32.totalorder %v2175_v27, 1 }
  0x10   : > { %v306_v0 = vld [vmem:[%s300_s10] sm:$0xff]  ;;  %v426_v11 = vsel %vm425_vm0, %v422_v7, %v424_v8  ;;  %s2090_s19 = smov 17   ;;  %s2091_s20 = smov 111   ;;  %v405_v42 = vperm.slane %v1986_v41, 0  ;;  %v406_v43 = vperm.slane %v1986_v41, 1  ;;  %vm446_vm3 = vcmp.lt.s32.totalorder %v2175_v27, 127 }
  0x11   : > { %314 = vst [vmem:[#allocation1] ss:$2 sm:$0xff] %v306_v0  ;;  %v428_v12 = vmul.f32 %v426_v11, %v306_v0  ;;  %v1988_v45 = vld [vmem:[%s3165_s1 + $0x5] ss:$8 sm:$0x3]  ;;  %vm475_vm4 = vcmp.lt.s32.totalorder %v2175_v27, 113 }
  0x12   : > { %v452_v48 = vperm.slane %v1988_v45, 0  ;;  %v453_v49 = vperm.slane %v1988_v45, 1  ;;  %v1989_v61 = vld [vmem:[%s3165_s1 + $0x6] ss:$8 sm:$0x3]  ;;  %vm498_vm5 = vcmp.lt.s32.totalorder %v2175_v27, 112 }
  0x13   : > { %v481_v62 = vperm.slane %v1989_v61, 0  ;;  %v482_v63 = vperm.slane %v1989_v61, 1  ;;  %v1990_v7 = vld [vmem:[%s3165_s1 + $0x7] ss:$8 sm:$0x3]  ;;  %vm325_vm6 = vcmp.lt.s32.totalorder %v2175_v27, 17 }
  0x14   : > { %v504_v8 = vperm.slane %v1990_v7, 0  ;;  %vm527_vm7 = vcmp.lt.s32.totalorder %v2175_v27, 111  ;;  %vm376_vm8 = vcmp.lt.s32.totalorder %v2175_v27, 15 }
  0x18   : > { %v315_v1 = vld.sshfl [vmem:[#allocation1] sm:$0xff pattern:$0x75316420]  ;;  %v316_v2 = vld.sshfl [vmem:[#allocation1 + $0x8] sm:$0xff pattern:$0x75316420] }
  0x19   : > { %338 = vst [vmem:[#allocation1] ss:$2 sm:$0xff] %v306_v0 }
  0x20   : > { %v339_v4 = vld.sshfl [vmem:[#allocation1] sm:$0xff pattern:$0x75316420]  ;;  %v340_v5 = vld.sshfl [vmem:[#allocation1 + $0x8] sm:$0xff pattern:$0x75316420] }
  0x21   : > { %367 = vst [vmem:[#allocation1] ss:$2 sm:$0xff] %v306_v0  ;;  %343 = vrot.lane.b32.xlu1 %v339_v4, %s2084_s13  ;;  %345 = vrot.lane.b32.xlu2 %v340_v5, %s2084_s13 }
  0x28   : > { %v368_v9 = vld.sshfl [vmem:[#allocation1] sm:$0xff pattern:$0x75316420]  ;;  %v369_v10 = vld.sshfl [vmem:[#allocation1 + $0x8] sm:$0xff pattern:$0x75316420] }
  0x29   : > { %372 = vrot.lane.b32.xlu0 %v368_v9, %s2085_s14  ;;  %390 = vst [vmem:[#allocation1] ss:$2 sm:$0xff] %v306_v0  ;;  %v505_v9 = vperm.slane %v1990_v7, 1 }
  0x30   : > { %v392_v13 = vld.sshfl [vmem:[#allocation1 + $0x8] sm:$0xff pattern:$0x75316420]  ;;  %v391_v14 = vld.sshfl [vmem:[#allocation1] sm:$0xff pattern:$0x75316420] }
  0x31   : > { %397 = vrot.lane.b32.xlu0 %v392_v13, %s2086_s15  ;;  %430 = vst [vmem:[#allocation1] ss:$2 sm:$0xff] %v428_v12  ;;  %395 = vrot.lane.b32.xlu2 %v391_v14, %s2086_s15  ;;  %v310_v12 = vld [vmem:[%s3167_s3] sm:$0xff] }
  0x38   : > { %v431_v15 = vld.sshfl [vmem:[#allocation1] sm:$0xff pattern:$0x75316420]  ;;  %v432_v16 = vld.sshfl [vmem:[#allocation1 + $0x8] sm:$0xff pattern:$0x75316420] }
  0x39   : > { %437 = vst [vmem:[#allocation1] ss:$2 sm:$0xff] %v306_v0 }
  0x3a   : > { %435 = vst [vmem:[#allocation2 + $0x160] sm:$0xf] %v431_v15  ;;  %v3173_v15 = vmov 0  }
  0x3b   : > { %436 = vst [vmem:[#allocation2 + $0x128] sm:$0xf] %v432_v16  ;;  %2068 = vset.pattern.permute.xlu1 %v3173_v15  ;;  %2070 = vset.pattern.permute.xlu0 %v3173_v15 }
  0x3c   : > { %2069 = vset.pattern.permute.xlu2 %v3173_v15 }
  0x40   : > { %v438_v17 = vld.sshfl [vmem:[#allocation1] sm:$0xff pattern:$0x75316420]  ;;  %v439_v18 = vld.sshfl [vmem:[#allocation1 + $0x8] sm:$0xff pattern:$0x75316420] }
  0x41   : > { %466 = vst [vmem:[#allocation1] ss:$2 sm:$0xff] %v306_v0  ;;  %442 = vrot.lane.b32.xlu2 %v438_v17, %s2087_s16 }
  0x48   : > { %v467_v19 = vld.sshfl [vmem:[#allocation1] sm:$0xff pattern:$0x75316420]  ;;  %v468_v20 = vld.sshfl [vmem:[#allocation1 + $0x8] sm:$0xff pattern:$0x75316420] }
  0x49   : > { %471 = vrot.lane.b32.xlu0 %v467_v19, %s2088_s17  ;;  %473 = vrot.lane.b32.xlu1 %v468_v20, %s2088_s17  ;;  %489 = vst [vmem:[#allocation1] ss:$2 sm:$0xff] %v306_v0  ;;  %v1991_v19 = vld [vmem:[%s3165_s1 + $0x10] ss:$8 sm:$0x3] }
  0x4a   : > { %444 = vrot.lane.b32.xlu2 %v439_v18, %s2087_s16  ;;  %v328_v18 = vld [vmem:[%s3165_s1] ss:$8 sm:$0x3]  ;;  %v534_v26 = vperm.slane %v1991_v19, 1 }
  0x50   : > { %v490_v21 = vld.sshfl [vmem:[#allocation1] sm:$0xff pattern:$0x75316420]  ;;  %v491_v22 = vld.sshfl [vmem:[#allocation1 + $0x8] sm:$0xff pattern:$0x75316420] }
  0x51   : > { %494 = vrot.lane.b32.xlu0 %v490_v21, %s2089_s18  ;;  %518 = vst [vmem:[#allocation1] ss:$2 sm:$0xff] %v306_v0 }
  0x52   : > { %319 = vrot.lane.b32.xlu2 %v315_v1, %s2090_s19 }
  0x58   : > { %v519_v23 = vld.sshfl [vmem:[#allocation1] sm:$0xff pattern:$0x75316420]  ;;  %v520_v24 = vld.sshfl [vmem:[#allocation1 + $0x8] sm:$0xff pattern:$0x75316420] }
  0x59   : > { %496 = vrot.lane.b32.xlu0 %v491_v22, %s2089_s18  ;;  %523 = vrot.lane.b32.xlu1 %v519_v23, %s2091_s20  ;;  %v330_v23 = vperm.slane %v328_v18, 0 }
  0x61   : > { %321 = vrot.lane.b32.xlu0 %v316_v2, %s2090_s19  ;;  %525 = vrot.lane.b32.xlu1 %v520_v24, %s2091_s20  ;;  %v331_v24 = vperm.slane %v328_v18, 1 }
  0x69   : > { %374 = vrot.lane.b32.xlu1 %v369_v10, %s2085_s14 }
  0x71   : > { %553 = vperm.xlu1 %2068, %v310_v12  }
  0x7b   : > { %v346_v25 = vpop.permute.xlu2 %345 }
  0x8b   : > { %v396_v31 = vpop.permute.xlu2 %395 }
  0x93   : > { %v344_v32 = vpop.permute.xlu1 %343 }
  0x94   : > { %v348_v33 = vsel %vm347_vm1, %v344_v32, %v346_v25  ;;  %v349_v34 = vsel %vm347_vm1, %v346_v25, %v344_v32  ;;  %v533_v25 = vperm.slane %v1991_v19, 0  ;;  %v2003_v19 = vld [vmem:[%s3165_s1 + $0x4] ss:$8 sm:$0x3] }
  0x95   : > { %v357_v35 = vmul.f32 %v353_v29, %v349_v34  ;;  %v358_v36 = vmul.f32 %v354_v30, %v348_v33  ;;  %v311_v30 = vld [vmem:[%s3167_s3 + $0x8] sm:$0xff] }
  0x96   : > { %558 = vperm.xlu0 %2070, %v311_v30  }
  0x97   : > { %v361_v37 = vrot.slane %v357_v35, 4  ;;  %v362_v38 = vrot.slane %v358_v36, 4 }
  0x99   : > { %365 = vst [vmem:[#allocation2 + $0xb0] sm:$0xf0] %v361_v37 }
  0x9a   : > { %366 = vst [vmem:[#allocation2 + $0xd0] sm:$0xf0] %v362_v38 }
  0x9b   : > { %v2185_v39 = vpop.permute.xlu0 %372  ;;  %v443_v40 = vpop.permute.xlu2 %442 }
  0xa3   : > { %v398_v44 = vpop.permute.xlu0 %397 }
  0xa4   : > { %v400_v46 = vsel %vm399_vm2, %v396_v31, %v398_v44  ;;  %v401_v47 = vsel %vm399_vm2, %v398_v44, %v396_v31  ;;  %v445_v50 = vpop.permute.xlu2 %444  ;;  %v312_v44 = vld [vmem:[%s3167_s3 + $0x10] sm:$0xff] }
  0xa5   : > { %v409_v51 = vmul.f32 %v405_v42, %v401_v47  ;;  %v410_v52 = vmul.f32 %v406_v43, %v400_v46  ;;  %v447_v53 = vsel %vm446_vm3, %v443_v40, %v445_v50  ;;  %v448_v54 = vsel %vm446_vm3, %v445_v50, %v443_v40  ;;  %v1985_v40 = vld [vmem:[%s3165_s1 + $0x2] ss:$8 sm:$0x3]  ;;  %563 = vperm.xlu2 %2069, %v312_v44  }
  0xa6   : > { %v456_v55 = vmul.f32 %v452_v48, %v447_v53  ;;  %v457_v56 = vmul.f32 %v453_v49, %v448_v54  ;;  %v382_v41 = vperm.slane %v1985_v40, 0  ;;  %v383_v42 = vperm.slane %v1985_v40, 1 }
  0xa7   : > { %v413_v57 = vrot.slane %v409_v51, 4  ;;  %v414_v58 = vrot.slane %v410_v52, 4 }
  0xa8   : > { %v460_v59 = vrot.slane %v456_v55, 4  ;;  %v461_v60 = vrot.slane %v457_v56, 4  ;;  %v307_v56 = vld [vmem:[%s3166_s2] sm:$0xff] }
  0xa9   : > { %417 = vst [vmem:[#allocation2 + $0x10] sm:$0xf0] %v413_v57 }
  0xaa   : > { %418 = vst [vmem:[#allocation2 + $0x48] sm:$0xf0] %v414_v58 }
  0xab   : > { %464 = vst [vmem:[#allocation2 + $0x160] sm:$0xf0] %v460_v59  ;;  %v308_v59 = vld [vmem:[%s3166_s2 + $0x8] sm:$0xff] }
  0xac   : > { %465 = vst [vmem:[#allocation2 + $0x128] sm:$0xf0] %v461_v60  ;;  %v320_v22 = vpop.permute.xlu2 %319  ;;  %v309_v60 = vld [vmem:[%s3166_s2 + $0x10] sm:$0xff] }
  0xb2   : > { %v545_v53 = vld [vmem:[#allocation2 + $0x160] sm:$0xff] }
  0xb3   : > { %v546_v54 = vld [vmem:[#allocation2 + $0x128] sm:$0xff] }
  0xbb   : > { %v472_v0 = vpop.permute.xlu0 %471  ;;  %v474_v1 = vpop.permute.xlu1 %473 }
  0xbc   : > { %v476_v2 = vsel %vm475_vm4, %v472_v0, %v474_v1  ;;  %v477_v3 = vsel %vm475_vm4, %v474_v1, %v472_v0 }
  0xbd   : > { %v485_v4 = vmul.f32 %v481_v62, %v476_v2  ;;  %v486_v5 = vmul.f32 %v482_v63, %v477_v3 }
  0xbf   : > { %487 = vst [vmem:[#allocation2 + $0x40] sm:$0xf] %v485_v4 }
  0xc0   : > { %488 = vst [vmem:[#allocation2 + $0x178] sm:$0xf] %v486_v5 }
  0xc3   : > { %v495_v6 = vpop.permute.xlu0 %494 }
  0xcb   : > { %v497_v10 = vpop.permute.xlu0 %496  ;;  %v524_v11 = vpop.permute.xlu1 %523 }
  0xcc   : > { %v499_v13 = vsel %vm498_vm5, %v495_v6, %v497_v10  ;;  %v500_v14 = vsel %vm498_vm5, %v497_v10, %v495_v6 }
  0xcd   : > { %v508_v16 = vmul.f32 %v504_v8, %v499_v13  ;;  %v509_v17 = vmul.f32 %v505_v9, %v500_v14 }
  0xcf   : > { %v512_v20 = vrot.slane %v508_v16, 4  ;;  %v513_v21 = vrot.slane %v509_v17, 4  ;;  %v2004_v16 = vld [vmem:[%s3165_s1 + $0x5] ss:$8 sm:$0x3] }
  0xd0   : > { %v2349_v17 = vperm.slane %v2004_v16, 0  ;;  %v2351_v18 = vperm.slane %v2004_v16, 1 }
  0xd1   : > { %516 = vst [vmem:[#allocation2 + $0x40] sm:$0xf0] %v512_v20 }
  0xd2   : > { %517 = vst [vmem:[#allocation2 + $0x178] sm:$0xf0] %v513_v21 }
  0xd3   : > { %v322_v28 = vpop.permute.xlu0 %321  ;;  %v526_v29 = vpop.permute.xlu1 %525 }
  0xd4   : > { %v326_v31 = vsel %vm325_vm6, %v320_v22, %v322_v28  ;;  %v327_v32 = vsel %vm325_vm6, %v322_v28, %v320_v22  ;;  %v528_v33 = vsel %vm527_vm7, %v524_v11, %v526_v29  ;;  %v529_v34 = vsel %vm527_vm7, %v526_v29, %v524_v11 }
  0xd5   : > { %v334_v35 = vmul.f32 %v330_v23, %v327_v32  ;;  %v335_v36 = vmul.f32 %v331_v24, %v326_v31  ;;  %v537_v37 = vmul.f32 %v533_v25, %v528_v33  ;;  %v538_v38 = vmul.f32 %v534_v26, %v529_v34  ;;  %v642_v31 = vld [vmem:[%s3169_s5 + $0x10] sm:$0xff] }
  0xd6   : > { %v789_v25 = vperm.slane %v2003_v19, 0  ;;  %v790_v33 = vperm.slane %v2003_v19, 1 }
  0xd7   : > { %336 = vst [vmem:[#allocation2 + $0xb0] sm:$0xf] %v334_v35 }
  0xd8   : > { %337 = vst [vmem:[#allocation2 + $0xd0] sm:$0xf] %v335_v36  ;;  %v547_v51 = vld [vmem:[#allocation2 + $0x40] sm:$0xff] }
  0xd9   : > { %539 = vst [vmem:[#allocation2 + $0x108] sm:$0xf] %v537_v37  ;;  %v548_v52 = vld [vmem:[#allocation2 + $0x178] sm:$0xff] }
  0xda   : > { %540 = vst [vmem:[#allocation2 + $0x110] sm:$0xf] %v538_v38 }
  0xdb   : > { %v375_v43 = vpop.permute.xlu1 %374 }
  0xdc   : > { %v377_v45 = vsel %vm376_vm8, %v2185_v39, %v375_v43  ;;  %v378_v46 = vsel %vm376_vm8, %v375_v43, %v2185_v39 }
  0xdd   : > { %v386_v47 = vmul.f32 %v382_v41, %v378_v46  ;;  %v387_v48 = vmul.f32 %v383_v42, %v377_v45  ;;  %v640_v45 = vld [vmem:[%s3169_s5] sm:$0xff] }
  0xde   : > { %v541_v57 = vld [vmem:[#allocation2 + $0xb0] sm:$0xff] }
  0xdf   : > { %388 = vst [vmem:[#allocation2 + $0x10] sm:$0xf] %v386_v47  ;;  %v542_v58 = vld [vmem:[#allocation2 + $0xd0] sm:$0xff] }
  0xe0   : > { %389 = vst [vmem:[#allocation2 + $0x48] sm:$0xf] %v387_v48  ;;  %v549_v49 = vld [vmem:[#allocation2 + $0x108] sm:$0xf] }
  0xe1   : > { %1992 = vmatpush.msk.msra.mxu0 %vm425_vm0, %v549_v49  ;;  %v550_v50 = vld [vmem:[#allocation2 + $0x110] sm:$0xf] }
  0xe2   : > { %1996 = vmatpush.msk.msra.mxu1 %vm425_vm0, %v550_v50 }
  0xe3   : > { %594 = vmatpush.msra.mxu0 %v547_v51  ;;  %v554_v61 = vpop.permute.xlu1 %553  ;;  %v641_v51 = vld [vmem:[%s3169_s5 + $0x8] sm:$0xff] }
  0xe4   : > { %620 = vmatpush.msra.mxu1 %v548_v52 }
  0xe5   : > { %595 = vmatpush.msra.mxu0 %v545_v53 }
  0xe6   : > { %621 = vmatpush.msra.mxu1 %v546_v54  ;;  %v543_v39 = vld [vmem:[#allocation2 + $0x10] sm:$0xff] }
  0xe7   : > { %596 = vmatpush.msra.mxu0 %v543_v39  ;;  %v544_v55 = vld [vmem:[#allocation2 + $0x48] sm:$0xff] }
  0xe8   : > { %622 = vmatpush.msra.mxu1 %v544_v55 }
  0xe9   : > { %597 = vmatpush.msra.mxu0 %v541_v57 }
  0xea   : > { %623 = vmatpush.msra.mxu1 %v542_v58  ;;  %1993 = vmatmul.msk.f32.vlgmr.msra.gmra.mxu0 %vm566_vm9, %v307_v56 }
  0xeb   : > { %1997 = vmatmul.msk.f32.vlgmr.msra.gmra.mxu1 %vm566_vm9, %v307_v56 }
  0xf2   : > { %1994 = vmatmul.msk.f32.gmra.mxu0 %vm566_vm9, %v308_v59 }
  0xf3   : > { %1998 = vmatmul.msk.f32.gmra.mxu1 %vm566_vm9, %v308_v59 }
  0xfa   : > { %1995 = vmatmul.msk.f32.gmra.mxu0 %vm566_vm9, %v309_v60 }
  0xfb   : > { %1999 = vmatmul.msk.f32.gmra.mxu1 %vm566_vm9, %v309_v60 }
  0xff   : > { %v564_v7 = vpop.permute.xlu2 %563 }
 0x108   : > { %v559_v2 = vpop.permute.xlu0 %558 }
 0x167   : > { %v599_v62 = vpop.f32.mrf.mxu0 }
 0x168   : > { %v625_v63 = vpop.f32.mrf.mxu1  ;;  %v2274_v0 = vadd.f32 %v599_v62, %v554_v61 }
 0x169   : > { %v2276_v1 = vadd.f32 %v625_v63, %v554_v61 }
 0x16a   : > { %805 = vrot.lane.b32.xlu1 %v2274_v0, %s2087_s16  ;;  %v793_v38 = vmul.f32 %v789_v25, %v2274_v0 }
 0x16b   : > { %757 = vrot.lane.b32.xlu0 %v2276_v1, %s2086_s15  ;;  %811 = vrot.lane.b32.xlu2 %v2276_v1, %s2087_s16  ;;  %v794_v44 = vmul.f32 %v790_v33, %v2276_v1 }
 0x16f   : > { %v602_v5 = vpop.f32.mrf.mxu0 }
 0x170   : > { %v628_v3 = vpop.f32.mrf.mxu1  ;;  %v603_v6 = vadd.f32 %v602_v5, %v559_v2 }
 0x171   : > { %v2302_v4 = vadd.f32 %v628_v3, %v559_v2 }
 0x172   : > { %919 = vrot.lane.b32.xlu1 %v2276_v1, %s2091_s20  ;;  %v795_v35 = vmul.f32 %v789_v25, %v603_v6 }
 0x173   : > { %913 = vrot.lane.b32.xlu0 %v2274_v0, %s2091_s20  ;;  %751 = vrot.lane.b32.xlu2 %v2274_v0, %s2086_s15  ;;  %v796_v37 = vmul.f32 %v790_v33, %v2302_v4 }
 0x177   : > { %v605_v8 = vpop.f32.mrf.mxu0 }
 0x178   : > { %v606_v9 = vadd.f32 %v605_v8, %v564_v7  ;;  %v631_v10 = vpop.f32.mrf.mxu1 }
 0x179   : > { %v632_v11 = vadd.f32 %v631_v10, %v564_v7  ;;  %v2002_v10 = vld [vmem:[%s3165_s1 + $0x3] ss:$8 sm:$0x3] }
 0x17a   : > { %883 = vrot.lane.b32.xlu1 %v2276_v1, %s2089_s18  ;;  %v797_v32 = vmul.f32 %v789_v25, %v606_v9 }
 0x17b   : > { %721 = vrot.lane.b32.xlu0 %v2276_v1, %s2085_s14  ;;  %715 = vrot.lane.b32.xlu2 %v2274_v0, %s2085_s14  ;;  %v798_v34 = vmul.f32 %v790_v33, %v632_v11 }
 0x182   : > { %847 = vrot.lane.b32.xlu1 %v2276_v1, %s2088_s17 }
 0x183   : > { %877 = vrot.lane.b32.xlu0 %v2274_v0, %s2089_s18  ;;  %679 = vrot.lane.b32.xlu2 %v2274_v0, %s2084_s13 }
 0x18a   : > { %759 = vrot.lane.b32.xlu1 %v2302_v4, %s2086_s15 }
 0x18b   : > { %685 = vrot.lane.b32.xlu0 %v2276_v1, %s2084_s13  ;;  %643 = vrot.lane.b32.xlu2 %v2274_v0, %s2090_s19 }
 0x192   : > { %717 = vrot.lane.b32.xlu1 %v603_v6, %s2085_s14 }
 0x193   : > { %841 = vrot.lane.b32.xlu0 %v2274_v0, %s2088_s17  ;;  %915 = vrot.lane.b32.xlu2 %v603_v6, %s2091_s20 }
 0x19a   : > { %681 = vrot.lane.b32.xlu1 %v603_v6, %s2084_s13 }
 0x19b   : > { %649 = vrot.lane.b32.xlu0 %v2276_v1, %s2090_s19  ;;  %723 = vrot.lane.b32.xlu2 %v2302_v4, %s2085_s14 }
 0x1a2   : > { %645 = vrot.lane.b32.xlu1 %v603_v6, %s2090_s19 }
 0x1a3   : > { %753 = vrot.lane.b32.xlu0 %v603_v6, %s2086_s15  ;;  %879 = vrot.lane.b32.xlu2 %v603_v6, %s2089_s18 }
 0x1aa   : > { %755 = vrot.lane.b32.xlu1 %v606_v9, %s2086_s15 }
 0x1ab   : > { %921 = vrot.lane.b32.xlu0 %v2302_v4, %s2091_s20  ;;  %687 = vrot.lane.b32.xlu2 %v2302_v4, %s2084_s13 }
 0x1b2   : > { %917 = vrot.lane.b32.xlu1 %v606_v9, %s2091_s20 }
 0x1b3   : > { %885 = vrot.lane.b32.xlu0 %v2302_v4, %s2089_s18  ;;  %843 = vrot.lane.b32.xlu2 %v603_v6, %s2088_s17 }
 0x1ba   : > { %725 = vrot.lane.b32.xlu1 %v632_v11, %s2085_s14 }
 0x1bb   : > { %849 = vrot.lane.b32.xlu0 %v2302_v4, %s2088_s17  ;;  %651 = vrot.lane.b32.xlu2 %v2302_v4, %s2090_s19 }
 0x1c2   : > { %881 = vrot.lane.b32.xlu1 %v606_v9, %s2089_s18 }
 0x1c3   : > { %719 = vrot.lane.b32.xlu0 %v606_v9, %s2085_s14  ;;  %761 = vrot.lane.b32.xlu2 %v632_v11, %s2086_s15 }
 0x1c5   : > { %v812_v12 = vpop.permute.xlu2 %811 }
 0x1ca   : > { %689 = vrot.lane.b32.xlu1 %v632_v11, %s2084_s13 }
 0x1cb   : > { %683 = vrot.lane.b32.xlu0 %v606_v9, %s2084_s13  ;;  %923 = vrot.lane.b32.xlu2 %v632_v11, %s2091_s20 }
 0x1cd   : > { %v752_v13 = vpop.permute.xlu2 %751 }
 0x1d2   : > { %845 = vrot.lane.b32.xlu1 %v606_v9, %s2088_s17 }
 0x1d3   : > { %647 = vrot.lane.b32.xlu0 %v606_v9, %s2090_s19  ;;  %887 = vrot.lane.b32.xlu2 %v632_v11, %s2089_s18 }
 0x1d5   : > { %v716_v14 = vpop.permute.xlu2 %715 }
 0x1da   : > { %653 = vrot.lane.b32.xlu1 %v632_v11, %s2090_s19 }
 0x1db   : > { %807 = vrot.lane.b32.xlu0 %v603_v6, %s2087_s16  ;;  %851 = vrot.lane.b32.xlu2 %v632_v11, %s2088_s17 }
 0x1dc   : > { %v806_v20 = vpop.permute.xlu1 %805 }
 0x1dd   : > { %v758_v21 = vpop.permute.xlu0 %757  ;;  %v680_v22 = vpop.permute.xlu2 %679  ;;  %v817_v23 = vsel %vm446_vm3, %v806_v20, %v812_v12  ;;  %v820_v24 = vsel %vm446_vm3, %v812_v12, %v806_v20  ;;  %v771_v12 = vperm.slane %v2002_v10, 0 }
 0x1de   : > { %v2364_v26 = vsel %vm399_vm2, %v752_v13, %v758_v21  ;;  %v2368_v28 = vsel %vm399_vm2, %v758_v21, %v752_v13  ;;  %v829_v29 = vmul.f32 %v2349_v17, %v817_v23  ;;  %v830_v30 = vmul.f32 %v2351_v18, %v820_v24 }
 0x1df   : > { %v772_v13 = vperm.slane %v2002_v10, 1 }
 0x1e0   : > { %1028 = vmatpush.msra.mxu2 %v829_v29  ;;  %1080 = vmatpush.msrb.mxu0 %v830_v30  ;;  %v2007_v30 = vld [vmem:[%s3165_s1 + $0x10] ss:$8 sm:$0x3] }
 0x1e2   : > { %809 = vrot.lane.b32.xlu1 %v606_v9, %s2087_s16  ;;  %1029 = vmatpush.msra.mxu2 %v797_v32  ;;  %v776_v32 = vmul.f32 %v772_v13, %v2364_v26 }
 0x1e3   : > { %1015 = vperm.xlu0 %2070, %v642_v31   ;;  %815 = vrot.lane.b32.xlu2 %v632_v11, %s2087_s16  ;;  %v775_v31 = vmul.f32 %v771_v12, %v2368_v28 }
 0x1e4   : > { %v920_v36 = vpop.permute.xlu1 %919  ;;  %1081 = vmatpush.msrb.mxu0 %v798_v34  ;;  %1030 = vmatpush.msra.mxu2 %v795_v35  ;;  %v933_v34 = vperm.slane %v2007_v30, 0  ;;  %v934_v35 = vperm.slane %v2007_v30, 1 }
 0x1e5   : > { %v914_v40 = vpop.permute.xlu0 %913  ;;  %v644_v41 = vpop.permute.xlu2 %643 }
 0x1e6   : > { %v2381_v42 = vsel %vm527_vm7, %v914_v40, %v920_v36  ;;  %v2385_v43 = vsel %vm527_vm7, %v920_v36, %v914_v40  ;;  %1082 = vmatpush.msrb.mxu0 %v796_v37  ;;  %1031 = vmatpush.msra.mxu2 %v793_v38 }
 0x1e8   : > { %1083 = vmatpush.msrb.mxu0 %v794_v44 }
 0x1ea   : > { %813 = vrot.lane.b32.xlu1 %v2302_v4, %s2087_s16 }
 0x1eb   : > { %1005 = vperm.xlu2 %2069, %v640_v45  }
 0x1ec   : > { %v884_v46 = vpop.permute.xlu1 %883 }
 0x1ed   : > { %v722_v47 = vpop.permute.xlu0 %721  ;;  %v916_v48 = vpop.permute.xlu2 %915 }
 0x1ee   : > { %v2395_v49 = vsel %vm376_vm8, %v716_v14, %v722_v47  ;;  %v2399_v50 = vsel %vm376_vm8, %v722_v47, %v716_v14  ;;  %v937_v47 = vmul.f32 %v933_v34, %v2381_v42 }
 0x1f2   : > { %1010 = vperm.xlu1 %2068, %v641_v51   ;;  %v938_v51 = vmul.f32 %v934_v35, %v2385_v43 }
 0x1f4   : > { %v848_v52 = vpop.permute.xlu1 %847 }
 0x1f5   : > { %v878_v53 = vpop.permute.xlu0 %877  ;;  %v2404_v54 = vpop.permute.xlu2 %723 }
 0x1f6   : > { %v2408_v39 = vsel %vm498_vm5, %v878_v53, %v884_v46  ;;  %v2412_v55 = vsel %vm498_vm5, %v884_v46, %v878_v53  ;;  %v2001_v53 = vld [vmem:[%s3165_s1 + $0x2] ss:$8 sm:$0x3] }
 0x1fc   : > { %v760_v56 = vpop.permute.xlu1 %759 }
 0x1fd   : > { %v686_v57 = vpop.permute.xlu0 %685  ;;  %v2414_v58 = vpop.permute.xlu2 %879 }
 0x1fe   : > { %v2418_v59 = vsel %vm347_vm1, %v680_v22, %v686_v57  ;;  %v2422_v60 = vsel %vm347_vm1, %v686_v57, %v680_v22  ;;  %v735_v57 = vperm.slane %v2001_v53, 0 }
 0x204   : > { %v2424_v61 = vpop.permute.xlu1 %717 }
 0x205   : > { %v842_v62 = vpop.permute.xlu0 %841  ;;  %v2426_v63 = vpop.permute.xlu2 %687  ;;  %v728_v43 = vsel %vm376_vm8, %v2424_v61, %v2404_v54 }
 0x206   : > { %v2430_v0 = vsel %vm475_vm4, %v842_v62, %v848_v52  ;;  %v2434_v1 = vsel %vm475_vm4, %v848_v52, %v842_v62  ;;  %v736_v62 = vperm.slane %v2001_v53, 1 }
 0x20c   : > { %v2436_v2 = vpop.permute.xlu1 %681 }
 0x20d   : > { %v650_v3 = vpop.permute.xlu0 %649  ;;  %v2438_v4 = vpop.permute.xlu2 %843 }
 0x20e   : > { %v2442_v5 = vsel %vm325_vm6, %v644_v41, %v650_v3  ;;  %v2446_v6 = vsel %vm325_vm6, %v650_v3, %v644_v41 }
 0x214   : > { %v2448_v7 = vpop.permute.xlu1 %645 }
 0x215   : > { %v754_v8 = vpop.permute.xlu0 %753  ;;  %v2450_v9 = vpop.permute.xlu2 %651 }
 0x216   : > { %v764_v19 = vsel %vm399_vm2, %v754_v8, %v760_v56  ;;  %v767_v20 = vsel %vm399_vm2, %v760_v56, %v754_v8  ;;  %v2006_v56 = vld [vmem:[%s3165_s1 + $0x7] ss:$8 sm:$0x3]  ;;  %v731_v8 = vsel %vm376_vm8, %v2404_v54, %v2424_v61 }
 0x217   : > { %v777_v25 = vmul.f32 %v771_v12, %v767_v20  ;;  %v778_v29 = vmul.f32 %v772_v13, %v764_v19  ;;  %v897_v42 = vperm.slane %v2006_v56, 0  ;;  %v898_v3 = vperm.slane %v2006_v56, 1 }
 0x219   : > { %v901_v30 = vmul.f32 %v897_v42, %v2408_v39 }
 0x21c   : > { %v756_v11 = vpop.permute.xlu1 %755 }
 0x21d   : > { %v922_v14 = vpop.permute.xlu0 %921  ;;  %v762_v16 = vpop.permute.xlu2 %761 }
 0x21e   : > { %v765_v21 = vsel %vm399_vm2, %v756_v11, %v762_v16  ;;  %v768_v22 = vsel %vm399_vm2, %v762_v16, %v756_v11  ;;  %v926_v38 = vsel %vm527_vm7, %v916_v48, %v922_v14  ;;  %v929_v40 = vsel %vm527_vm7, %v922_v14, %v916_v48 }
 0x21f   : > { %v779_v23 = vmul.f32 %v771_v12, %v768_v22  ;;  %v780_v24 = vmul.f32 %v772_v13, %v765_v21  ;;  %v939_v45 = vmul.f32 %v933_v34, %v926_v38  ;;  %v940_v46 = vmul.f32 %v934_v35, %v929_v40 }
 0x221   : > { %1032 = vmatpush.msra.mxu2 %v779_v23  ;;  %1084 = vmatpush.msrb.mxu0 %v780_v24 }
 0x223   : > { %1033 = vmatpush.msra.mxu2 %v777_v25  ;;  %1085 = vmatpush.msrb.mxu0 %v778_v29  ;;  %v742_v29 = vmul.f32 %v736_v62, %v728_v43 }
 0x224   : > { %v918_v33 = vpop.permute.xlu1 %917 }
 0x225   : > { %v886_v36 = vpop.permute.xlu0 %885  ;;  %v924_v37 = vpop.permute.xlu2 %923  ;;  %1086 = vmatpush.msrb.mxu0 %v776_v32  ;;  %1034 = vmatpush.msra.mxu2 %v775_v31  ;;  %v902_v31 = vmul.f32 %v898_v3, %v2412_v55  ;;  %v2000_v32 = vld [vmem:[%s3165_s1 + $0x1] ss:$8 sm:$0x3]  ;;  %v692_v55 = vsel %vm347_vm1, %v2436_v2, %v2426_v63 }
 0x226   : > { %v927_v28 = vsel %vm527_vm7, %v918_v33, %v924_v37  ;;  %v930_v26 = vsel %vm527_vm7, %v924_v37, %v918_v33  ;;  %v890_v12 = vsel %vm498_vm5, %v2414_v58, %v886_v36  ;;  %v893_v13 = vsel %vm498_vm5, %v886_v36, %v2414_v58 }
 0x227   : > { %v941_v41 = vmul.f32 %v933_v34, %v927_v28  ;;  %v942_v44 = vmul.f32 %v934_v35, %v930_v26  ;;  %v903_v24 = vmul.f32 %v897_v42, %v890_v12  ;;  %v904_v25 = vmul.f32 %v898_v3, %v893_v13  ;;  %v2005_v26 = vld [vmem:[%s3165_s1 + $0x6] ss:$8 sm:$0x3] }
 0x228   : > { %v741_v58 = vmul.f32 %v735_v57, %v731_v8  ;;  %v739_v33 = vmul.f32 %v735_v57, %v2399_v50  ;;  %v740_v34 = vmul.f32 %v736_v62, %v2395_v49  ;;  %v699_v36 = vperm.slane %v2000_v32, 0 }
 0x229   : > { %1059 = vmatpush.msra.mxu3 %v941_v41  ;;  %1111 = vmatpush.msrb.mxu1 %v942_v44  ;;  %v700_v37 = vperm.slane %v2000_v32, 1  ;;  %v695_v49 = vsel %vm347_vm1, %v2426_v63, %v2436_v2  ;;  %v861_v2 = vperm.slane %v2005_v26, 0  ;;  %v656_v12 = vsel %vm325_vm6, %v2448_v7, %v2450_v9 }
 0x22a   : > { %v705_v41 = vmul.f32 %v699_v36, %v695_v49 }
 0x22b   : > { %1060 = vmatpush.msra.mxu3 %v939_v45  ;;  %1112 = vmatpush.msrb.mxu1 %v940_v46  ;;  %v706_v44 = vmul.f32 %v700_v37, %v692_v55  ;;  %v703_v45 = vmul.f32 %v699_v36, %v2422_v60  ;;  %v704_v63 = vmul.f32 %v700_v37, %v2418_v59  ;;  %v862_v46 = vperm.slane %v2005_v26, 1 }
 0x22c   : > { %v726_v52 = vpop.permute.xlu1 %725 }
 0x22d   : > { %v2478_v48 = vpop.permute.xlu0 %849  ;;  %1061 = vmatpush.msra.mxu3 %v937_v47  ;;  %1113 = vmatpush.msrb.mxu1 %v938_v51  ;;  %v888_v10 = vpop.permute.xlu2 %887 }
 0x22e   : > { %v854_v47 = vsel %vm475_vm4, %v2438_v4, %v2478_v48  ;;  %v857_v53 = vsel %vm475_vm4, %v2478_v48, %v2438_v4  ;;  %v865_v4 = vmul.f32 %v861_v2, %v2430_v0  ;;  %v866_v48 = vmul.f32 %v862_v46, %v2434_v1 }
 0x22f   : > { %v659_v0 = vsel %vm325_vm6, %v2450_v9, %v2448_v7  ;;  %v634_v7 = vld [vmem:[%s3168_s4] sm:$0xff] }
 0x234   : > { %v882_v11 = vpop.permute.xlu1 %881 }
 0x235   : > { %v720_v14 = vpop.permute.xlu0 %719  ;;  %v891_v16 = vsel %vm498_vm5, %v882_v11, %v888_v10  ;;  %v894_v19 = vsel %vm498_vm5, %v888_v10, %v882_v11  ;;  %v852_v51 = vpop.permute.xlu2 %851 }
 0x236   : > { %v729_v54 = vsel %vm376_vm8, %v720_v14, %v726_v52  ;;  %v732_v61 = vsel %vm376_vm8, %v726_v52, %v720_v14  ;;  %v905_v20 = vmul.f32 %v897_v42, %v891_v16  ;;  %v906_v21 = vmul.f32 %v898_v3, %v894_v19  ;;  %v661_v3 = vld [vmem:[%s3165_s1] ss:$8 sm:$0x3] }
 0x237   : > { %v743_v22 = vmul.f32 %v735_v57, %v732_v61  ;;  %v744_v23 = vmul.f32 %v736_v62, %v729_v54  ;;  %v867_v62 = vmul.f32 %v861_v2, %v854_v47  ;;  %v868_v42 = vmul.f32 %v862_v46, %v857_v53 }
 0x238   : > { %1062 = vmatpush.msra.mxu3 %v905_v20  ;;  %1114 = vmatpush.msrb.mxu1 %v906_v21  ;;  %v663_v43 = vperm.slane %v661_v3, 0  ;;  %v664_v8 = vperm.slane %v661_v3, 1 }
 0x239   : > { %1035 = vmatpush.msra.mxu2 %v743_v22  ;;  %1087 = vmatpush.msrb.mxu0 %v744_v23 }
 0x23a   : > { %1063 = vmatpush.msra.mxu3 %v903_v24  ;;  %1115 = vmatpush.msrb.mxu1 %v904_v25  ;;  %v669_v19 = vmul.f32 %v663_v43, %v659_v0  ;;  %v670_v54 = vmul.f32 %v664_v8, %v656_v12  ;;  %v667_v61 = vmul.f32 %v663_v43, %v2446_v6  ;;  %v636_v24 = vld [vmem:[%s3168_s4 + $0x10] sm:$0xff] }
 0x23b   : > { %1036 = vmatpush.msra.mxu2 %v741_v58  ;;  %1088 = vmatpush.msrb.mxu0 %v742_v29  ;;  %v668_v20 = vmul.f32 %v664_v8, %v2442_v5 }
 0x23c   : > { %v690_v35 = vpop.permute.xlu1 %689  ;;  %1064 = vmatpush.msra.mxu3 %v901_v30  ;;  %1116 = vmatpush.msrb.mxu1 %v902_v31 }
 0x23d   : > { %v684_v39 = vpop.permute.xlu0 %683  ;;  %1089 = vmatpush.msrb.mxu0 %v740_v34  ;;  %1037 = vmatpush.msra.mxu2 %v739_v33  ;;  %v816_v9 = vpop.permute.xlu2 %815  ;;  %v635_v33 = vld [vmem:[%s3168_s4 + $0x8] sm:$0xff]  ;;  %v638_v34 = vld [vmem:[%s3168_s4 + $0x20] sm:$0xff] }
 0x23e   : > { %v693_v50 = vsel %vm347_vm1, %v684_v39, %v690_v35  ;;  %v696_v38 = vsel %vm347_vm1, %v690_v35, %v684_v39 }
 0x23f   : > { %v707_v40 = vmul.f32 %v699_v36, %v696_v38  ;;  %v708_v28 = vmul.f32 %v700_v37, %v693_v50  ;;  %v2023_v36 = vld [vmem:[%s3165_s1 + $0x4] ss:$8 sm:$0x3] }
 0x240   : > { %v1317_v49 = vperm.slane %v2023_v36, 1 }
 0x241   : > { %1038 = vmatpush.msra.mxu2 %v707_v40  ;;  %1090 = vmatpush.msrb.mxu0 %v708_v28 }
 0x243   : > { %1039 = vmatpush.msra.mxu2 %v705_v41  ;;  %1091 = vmatpush.msrb.mxu0 %v706_v44  ;;  %v1316_v41 = vperm.slane %v2023_v36, 0 }
 0x244   : > { %v846_v52 = vpop.permute.xlu1 %845 }
 0x245   : > { %v855_v60 = vsel %vm475_vm4, %v846_v52, %v852_v51  ;;  %v858_v59 = vsel %vm475_vm4, %v852_v51, %v846_v52  ;;  %1092 = vmatpush.msrb.mxu0 %v704_v63  ;;  %1040 = vmatpush.msra.mxu2 %v703_v45  ;;  %v648_v10 = vpop.permute.xlu0 %647  ;;  %v1006_v37 = vpop.permute.xlu2 %1005 }
 0x246   : > { %v869_v56 = vmul.f32 %v861_v2, %v855_v60  ;;  %v870_v57 = vmul.f32 %v862_v46, %v858_v59 }
 0x248   : > { %1065 = vmatpush.msra.mxu3 %v869_v56  ;;  %1117 = vmatpush.msrb.mxu1 %v870_v57 }
 0x24a   : > { %1066 = vmatpush.msra.mxu3 %v867_v62  ;;  %1118 = vmatpush.msrb.mxu1 %v868_v42 }
 0x24c   : > { %v654_v11 = vpop.permute.xlu1 %653  ;;  %1067 = vmatpush.msra.mxu3 %v865_v4  ;;  %1119 = vmatpush.msrb.mxu1 %v866_v48 }
 0x24d   : > { %v657_v1 = vsel %vm325_vm6, %v648_v10, %v654_v11  ;;  %v660_v13 = vsel %vm325_vm6, %v654_v11, %v648_v10  ;;  %v808_v25 = vpop.permute.xlu0 %807 }
 0x24e   : > { %v671_v14 = vmul.f32 %v663_v43, %v660_v13  ;;  %v672_v16 = vmul.f32 %v664_v8, %v657_v1 }
 0x250   : > { %1041 = vmatpush.msra.mxu2 %v671_v14  ;;  %1093 = vmatpush.msrb.mxu0 %v672_v16  ;;  %v2024_v14 = vld [vmem:[%s3165_s1 + $0x5] ss:$8 sm:$0x3] }
 0x252   : > { %1042 = vmatpush.msra.mxu2 %v669_v19  ;;  %1094 = vmatpush.msrb.mxu0 %v670_v54  ;;  %v2719_v19 = vperm.slane %v2024_v14, 0  ;;  %v2721_v54 = vperm.slane %v2024_v14, 1 }
 0x254   : > { %v810_v21 = vpop.permute.xlu1 %809  ;;  %1095 = vmatpush.msrb.mxu0 %v668_v20  ;;  %1043 = vmatpush.msra.mxu2 %v667_v61 }
 0x255   : > { %v819_v22 = vsel %vm446_vm3, %v810_v21, %v816_v9  ;;  %v822_v23 = vsel %vm446_vm3, %v816_v9, %v810_v21  ;;  %1044 = vmatmul.f32.vlgmr.msra.gmra.mxu2 %v634_v7  ;;  %1096 = vmatmul.f32.vlgmr.msrb.gmra.mxu0 %v634_v7  ;;  %v1016_v56 = vpop.permute.xlu0 %1015 }
 0x256   : > { %v833_v5 = vmul.f32 %v2349_v17, %v819_v22  ;;  %v834_v6 = vmul.f32 %v2351_v18, %v822_v23  ;;  %v2022_v23 = vld [vmem:[%s3165_s1 + $0x3] ss:$8 sm:$0x3] }
 0x258   : > { %1068 = vmatpush.msra.mxu3 %v833_v5  ;;  %1120 = vmatpush.msrb.mxu1 %v834_v6  ;;  %v2740_v6 = vperm.slane %v2022_v23, 0 }
 0x25c   : > { %v814_v58 = vpop.permute.xlu1 %813 }
 0x25d   : > { %v818_v29 = vsel %vm446_vm3, %v808_v25, %v814_v58  ;;  %v821_v30 = vsel %vm446_vm3, %v814_v58, %v808_v25  ;;  %1047 = vmatmul.f32.gmra.mxu2 %v636_v24  ;;  %1099 = vmatmul.f32.gmra.mxu0 %v636_v24  ;;  %v2742_v24 = vperm.slane %v2022_v23, 1 }
 0x25e   : > { %v831_v31 = vmul.f32 %v2349_v17, %v818_v29  ;;  %v832_v32 = vmul.f32 %v2351_v18, %v821_v30  ;;  %v637_v17 = vld [vmem:[%s3168_s4 + $0x18] sm:$0xff]  ;;  %v639_v18 = vld [vmem:[%s3168_s4 + $0x28] sm:$0xff] }
 0x260   : > { %1069 = vmatpush.msra.mxu3 %v831_v31  ;;  %1121 = vmatpush.msrb.mxu1 %v832_v32 }
 0x261   : > { %2008 = vmatmul.msk.f32.vlgmr.msra.gmra.mxu3 %vm1018_vm10, %v635_v33  ;;  %2011 = vmatmul.msk.f32.vlgmr.msrb.gmra.mxu1 %vm1018_vm10, %v635_v33  ;;  %v2021_v33 = vld [vmem:[%s3165_s1 + $0x2] ss:$8 sm:$0x3] }
 0x264   : > { %v1011_v44 = vpop.permute.xlu1 %1010 }
 0x265   : > { %1050 = vmatmul.f32.gmra.mxu2 %v638_v34  ;;  %1102 = vmatmul.f32.gmra.mxu0 %v638_v34 }
 0x269   : > { %2009 = vmatmul.msk.f32.gmra.mxu3 %vm1018_vm10, %v637_v17  ;;  %2012 = vmatmul.msk.f32.gmra.mxu1 %vm1018_vm10, %v637_v17  ;;  %v2765_v17 = vperm.slane %v2021_v33, 0 }
 0x271   : > { %2010 = vmatmul.msk.f32.gmra.mxu3 %vm1018_vm10, %v639_v18  ;;  %2013 = vmatmul.msk.f32.gmra.mxu1 %vm1018_vm10, %v639_v18  ;;  %v2767_v18 = vperm.slane %v2021_v33, 1  ;;  %v2026_v33 = vld [vmem:[%s3165_s1 + $0x7] ss:$8 sm:$0x3] }
 0x2d2   : > { %v1097_v35 = vpop.f32.mrf.mxu0 }
 0x2d3   : > { %v1098_v55 = vadd.f32 %v1097_v35, %v1006_v37 }
 0x2d8   : > { %v1045_v39 = vpop.f32.mrf.mxu2 }
 0x2d9   : > { %v1046_v26 = vadd.f32 %v1045_v39, %v1006_v37 }
 0x2da   : > { %v1100_v40 = vpop.f32.mrf.mxu0 }
 0x2db   : > { %v1101_v63 = vadd.f32 %v1100_v40, %v1011_v44 }
 0x2de   : > { %v1123_v50 = vpop.f32.mrf.mxu1 }
 0x2df   : > { %v2602_v38 = vadd.f32 %v1123_v50, %v1098_v55  ;;  %v2020_v50 = vld [vmem:[%s3165_s1 + $0x1] ss:$8 sm:$0x3] }
 0x2e0   : > { %v1048_v46 = vpop.f32.mrf.mxu2 }
 0x2e1   : > { %1446 = vrot.lane.b32.xlu1 %v2602_v38, %s2091_s20  ;;  %1338 = vrot.lane.b32.xlu0 %v2602_v38, %s2087_s16  ;;  %v2609_v28 = vmul.f32 %v1317_v49, %v2602_v38  ;;  %v1049_v59 = vadd.f32 %v1048_v46, %v1011_v44 }
 0x2e2   : > { %v1103_v60 = vpop.f32.mrf.mxu0 }
 0x2e3   : > { %v1104_v62 = vadd.f32 %v1103_v60, %v1016_v56 }
 0x2e4   : > { %v1071_v45 = vpop.f32.mrf.mxu3 }
 0x2e5   : > { %v2611_v2 = vadd.f32 %v1071_v45, %v1046_v26  ;;  %v2786_v26 = vperm.slane %v2020_v50, 1 }
 0x2e6   : > { %v1126_v47 = vpop.f32.mrf.mxu1 }
 0x2e7   : > { %v2613_v51 = vadd.f32 %v1126_v47, %v1101_v63  ;;  %1332 = vrot.lane.b32.xlu2 %v2611_v2, %s2087_s16  ;;  %v2618_v52 = vmul.f32 %v1316_v41, %v2611_v2 }
 0x2e8   : > { %v1051_v43 = vpop.f32.mrf.mxu2 }
 0x2e9   : > { %1410 = vrot.lane.b32.xlu1 %v2602_v38, %s2089_s18  ;;  %1284 = vrot.lane.b32.xlu0 %v2602_v38, %s2086_s15  ;;  %v2625_v53 = vmul.f32 %v1317_v49, %v2613_v51  ;;  %v1052_v10 = vadd.f32 %v1051_v43, %v1016_v56 }
 0x2ec   : > { %v1074_v57 = vpop.f32.mrf.mxu3 }
 0x2ed   : > { %v2627_v42 = vadd.f32 %v1074_v57, %v1049_v59 }
 0x2ee   : > { %v1129_v3 = vpop.f32.mrf.mxu1 }
 0x2ef   : > { %3177 = vst [vmem:[#allocation3_spill] sm:$0xff] %v2627_v42  ;;  %v2629_v4 = vadd.f32 %v1129_v3, %v1104_v62  ;;  %1278 = vrot.lane.b32.xlu2 %v2611_v2, %s2086_s15  ;;  %v2634_v48 = vmul.f32 %v1316_v41, %v2627_v42 }
 0x2f1   : > { %1374 = vrot.lane.b32.xlu1 %v2602_v38, %s2088_s17  ;;  %1248 = vrot.lane.b32.xlu0 %v2602_v38, %s2085_s14  ;;  %v1325_v8 = vmul.f32 %v1317_v49, %v2629_v4 }
 0x2f4   : > { %v1077_v11 = vpop.f32.mrf.mxu3 }
 0x2f5   : > { %v2641_v12 = vadd.f32 %v1077_v11, %v1052_v10 }
 0x2f7   : > { %3178 = vst [vmem:[#allocation4_spill] sm:$0xff] %v2641_v12  ;;  %1242 = vrot.lane.b32.xlu2 %v2611_v2, %s2085_s14  ;;  %v1324_v0 = vmul.f32 %v1316_v41, %v2641_v12 }
 0x2f9   : > { %1212 = vrot.lane.b32.xlu0 %v2602_v38, %s2084_s13  ;;  %1286 = vrot.lane.b32.xlu1 %v2613_v51, %s2086_s15 }
 0x2ff   : > { %1206 = vrot.lane.b32.xlu2 %v2611_v2, %s2084_s13 }
 0x301   : > { %1176 = vrot.lane.b32.xlu0 %v2602_v38, %s2090_s19  ;;  %1244 = vrot.lane.b32.xlu1 %v2627_v42, %s2085_s14 }
 0x307   : > { %1170 = vrot.lane.b32.xlu2 %v2611_v2, %s2090_s19 }
 0x309   : > { %1208 = vrot.lane.b32.xlu1 %v2627_v42, %s2084_s13  ;;  %1440 = vrot.lane.b32.xlu0 %v2611_v2, %s2091_s20 }
 0x30f   : > { %1250 = vrot.lane.b32.xlu2 %v2613_v51, %s2085_s14 }
 0x311   : > { %1172 = vrot.lane.b32.xlu1 %v2627_v42, %s2090_s19  ;;  %1404 = vrot.lane.b32.xlu0 %v2611_v2, %s2089_s18 }
 0x317   : > { %1214 = vrot.lane.b32.xlu2 %v2613_v51, %s2084_s13 }
 0x319   : > { %1252 = vrot.lane.b32.xlu1 %v2629_v4, %s2085_s14  ;;  %1368 = vrot.lane.b32.xlu0 %v2611_v2, %s2088_s17 }
 0x31f   : > { %1178 = vrot.lane.b32.xlu2 %v2613_v51, %s2090_s19 }
 0x321   : > { %1216 = vrot.lane.b32.xlu1 %v2629_v4, %s2084_s13  ;;  %1448 = vrot.lane.b32.xlu0 %v2613_v51, %s2091_s20 }
 0x327   : > { %1442 = vrot.lane.b32.xlu2 %v2627_v42, %s2091_s20 }
 0x329   : > { %1180 = vrot.lane.b32.xlu1 %v2629_v4, %s2090_s19  ;;  %1412 = vrot.lane.b32.xlu0 %v2613_v51, %s2089_s18 }
 0x32f   : > { %1406 = vrot.lane.b32.xlu2 %v2627_v42, %s2089_s18 }
 0x331   : > { %1282 = vrot.lane.b32.xlu1 %v2641_v12, %s2086_s15  ;;  %1376 = vrot.lane.b32.xlu0 %v2613_v51, %s2088_s17 }
 0x337   : > { %1370 = vrot.lane.b32.xlu2 %v2627_v42, %s2088_s17 }
 0x339   : > { %1444 = vrot.lane.b32.xlu1 %v2641_v12, %s2091_s20  ;;  %1280 = vrot.lane.b32.xlu0 %v2627_v42, %s2086_s15 }
 0x33f   : > { %1288 = vrot.lane.b32.xlu2 %v2629_v4, %s2086_s15 }
 0x341   : > { %1408 = vrot.lane.b32.xlu1 %v2641_v12, %s2089_s18  ;;  %1246 = vrot.lane.b32.xlu0 %v2641_v12, %s2085_s14  ;;  %v1333_v1 = vpop.permute.xlu2 %1332 }
 0x347   : > { %1450 = vrot.lane.b32.xlu2 %v2629_v4, %s2091_s20 }
 0x349   : > { %1372 = vrot.lane.b32.xlu1 %v2641_v12, %s2088_s17  ;;  %1210 = vrot.lane.b32.xlu0 %v2641_v12, %s2084_s13  ;;  %v1279_v13 = vpop.permute.xlu2 %1278 }
 0x34f   : > { %1414 = vrot.lane.b32.xlu2 %v2629_v4, %s2089_s18 }
 0x351   : > { %1336 = vrot.lane.b32.xlu1 %v2641_v12, %s2087_s16  ;;  %1174 = vrot.lane.b32.xlu0 %v2641_v12, %s2090_s19  ;;  %v1243_v16 = vpop.permute.xlu2 %1242 }
 0x353   : > { %v1339_v61 = vpop.permute.xlu0 %1338  ;;  %v2723_v20 = vpop.permute.xlu1 %1446 }
 0x354   : > { %v1344_v7 = vsel %vm446_vm3, %v1333_v1, %v1339_v61  ;;  %v1347_v9 = vsel %vm446_vm3, %v1339_v61, %v1333_v1  ;;  %v2027_v1 = vld [vmem:[%s3165_s1 + $0x10] ss:$8 sm:$0x3] }
 0x355   : > { %v1356_v21 = vmul.f32 %v2719_v19, %v1344_v7  ;;  %v1357_v22 = vmul.f32 %v2721_v54, %v1347_v9  ;;  %v2834_v14 = vperm.slane %v2027_v1, 0 }
 0x357   : > { %1378 = vrot.lane.b32.xlu2 %v2629_v4, %s2088_s17  ;;  %1554 = vmatpush.msrb.mxu3 %v1356_v21 }
 0x358   : > { %1606 = vmatpush.msra.mxu1 %v1357_v22 }
 0x359   : > { %1340 = vrot.lane.b32.xlu1 %v2613_v51, %s2087_s16  ;;  %1334 = vrot.lane.b32.xlu0 %v2627_v42, %s2087_s16  ;;  %v1207_v5 = vpop.permute.xlu2 %1206 }
 0x35a   : > { %1555 = vmatpush.msrb.mxu3 %v1324_v0  ;;  %1607 = vmatpush.msra.mxu1 %v1325_v8 }
 0x35b   : > { %v1285_v25 = vpop.permute.xlu0 %1284  ;;  %v2744_v58 = vpop.permute.xlu1 %1410 }
 0x35c   : > { %v1290_v29 = vsel %vm399_vm2, %v1279_v13, %v1285_v25  ;;  %v1293_v30 = vsel %vm399_vm2, %v1285_v25, %v1279_v13  ;;  %1556 = vmatpush.msrb.mxu3 %v2634_v48  ;;  %1608 = vmatpush.msra.mxu1 %v2625_v53 }
 0x35d   : > { %v2753_v31 = vmul.f32 %v2740_v6, %v1293_v30  ;;  %v2756_v32 = vmul.f32 %v2742_v24, %v1290_v29 }
 0x35e   : > { %1557 = vmatpush.msrb.mxu3 %v2618_v52  ;;  %1609 = vmatpush.msra.mxu1 %v2609_v28  ;;  %v2784_v28 = vperm.slane %v2020_v50, 0  ;;  %v1188_v52 = vld [vmem:[%s3165_s1] ss:$8 sm:$0x3] }
 0x35f   : > { %1342 = vrot.lane.b32.xlu2 %v2629_v4, %s2087_s16  ;;  %v2805_v60 = vperm.slane %v1188_v52, 0  ;;  %v2807_v59 = vperm.slane %v1188_v52, 1 }
 0x361   : > { %v1171_v34 = vpop.permute.xlu2 %1170 }
 0x363   : > { %v1249_v35 = vpop.permute.xlu0 %1248  ;;  %v2769_v36 = vpop.permute.xlu1 %1374 }
 0x364   : > { %v1254_v37 = vsel %vm376_vm8, %v1243_v16, %v1249_v35  ;;  %v1257_v39 = vsel %vm376_vm8, %v1249_v35, %v1243_v16  ;;  %v2836_v16 = vperm.slane %v2027_v1, 1  ;;  %v2867_v35 = vperm.slane %v2026_v33, 1 }
 0x365   : > { %v2776_v55 = vmul.f32 %v2765_v17, %v1257_v39  ;;  %v2779_v49 = vmul.f32 %v2767_v18, %v1254_v37 }
 0x369   : > { %v1251_v40 = vpop.permute.xlu2 %1250 }
 0x36b   : > { %v1213_v41 = vpop.permute.xlu0 %1212  ;;  %v2788_v44 = vpop.permute.xlu1 %1286 }
 0x36c   : > { %v1218_v45 = vsel %vm347_vm1, %v1207_v5, %v1213_v41  ;;  %v1221_v63 = vsel %vm347_vm1, %v1213_v41, %v1207_v5 }
 0x36d   : > { %v2795_v46 = vmul.f32 %v2784_v28, %v1221_v63  ;;  %v2798_v47 = vmul.f32 %v2786_v26, %v1218_v45 }
 0x36f   : > { %1236 = vst [vmem:[#allocation2 + $0x40] sm:$0xff] %v2795_v46 }
 0x370   : > { %1237 = vst [vmem:[#allocation2 + $0x178] sm:$0xff] %v2798_v47 }
 0x371   : > { %v1215_v53 = vpop.permute.xlu2 %1214 }
 0x373   : > { %v1177_v56 = vpop.permute.xlu0 %1176  ;;  %v1245_v57 = vpop.permute.xlu1 %1244 }
 0x374   : > { %v1182_v62 = vsel %vm325_vm6, %v1171_v34, %v1177_v56  ;;  %v1185_v3 = vsel %vm325_vm6, %v1177_v56, %v1171_v34  ;;  %v1255_v48 = vsel %vm376_vm8, %v1245_v57, %v1251_v40  ;;  %v1258_v43 = vsel %vm376_vm8, %v1251_v40, %v1245_v57  ;;  %v2025_v57 = vld [vmem:[%s3165_s1 + $0x6] ss:$8 sm:$0x3] }
 0x375   : > { %v2818_v8 = vmul.f32 %v2805_v60, %v1185_v3  ;;  %v2821_v10 = vmul.f32 %v2807_v59, %v1182_v62  ;;  %v2824_v11 = vmul.f32 %v2765_v17, %v1258_v43  ;;  %v2827_v0 = vmul.f32 %v2767_v18, %v1255_v48 }
 0x376   : > { %v2865_v34 = vperm.slane %v2026_v33, 0  ;;  %v2896_v62 = vperm.slane %v2025_v57, 0  ;;  %v2898_v3 = vperm.slane %v2025_v57, 1 }
 0x377   : > { %1200 = vst [vmem:[#allocation2 + $0xb0] sm:$0xff] %v2818_v8 }
 0x378   : > { %1201 = vst [vmem:[#allocation2 + $0xd0] sm:$0xff] %v2821_v10 }
 0x379   : > { %v1179_v13 = vpop.permute.xlu2 %1178 }
 0x37b   : > { %v1209_v61 = vpop.permute.xlu1 %1208  ;;  %v1441_v7 = vpop.permute.xlu0 %1440 }
 0x37c   : > { %v1219_v9 = vsel %vm347_vm1, %v1209_v61, %v1215_v53  ;;  %v1222_v21 = vsel %vm347_vm1, %v1215_v53, %v1209_v61  ;;  %v1452_v22 = vsel %vm527_vm7, %v1441_v7, %v2723_v20  ;;  %v1455_v23 = vsel %vm527_vm7, %v2723_v20, %v1441_v7 }
 0x37d   : > { %v2849_v5 = vmul.f32 %v2784_v28, %v1222_v21  ;;  %v2852_v25 = vmul.f32 %v2786_v26, %v1219_v9  ;;  %v2855_v29 = vmul.f32 %v2834_v14, %v1452_v22  ;;  %v2858_v30 = vmul.f32 %v2836_v16, %v1455_v23 }
 0x37f   : > { %1238 = vst [vmem:[#allocation2 + $0x108] sm:$0xff] %v2849_v5 }
 0x380   : > { %1239 = vst [vmem:[#allocation2 + $0x110] sm:$0xff] %v2852_v25 }
 0x381   : > { %v1443_v20 = vpop.permute.xlu2 %1442 }
 0x383   : > { %v1173_v37 = vpop.permute.xlu1 %1172  ;;  %v1405_v39 = vpop.permute.xlu0 %1404 }
 0x384   : > { %v1183_v50 = vsel %vm325_vm6, %v1173_v37, %v1179_v13  ;;  %v1186_v40 = vsel %vm325_vm6, %v1179_v13, %v1173_v37  ;;  %v1416_v41 = vsel %vm498_vm5, %v1405_v39, %v2744_v58  ;;  %v1419_v45 = vsel %vm498_vm5, %v2744_v58, %v1405_v39 }
 0x385   : > { %v2880_v63 = vmul.f32 %v2805_v60, %v1186_v40  ;;  %v2883_v52 = vmul.f32 %v2807_v59, %v1183_v50  ;;  %v2886_v53 = vmul.f32 %v2865_v34, %v1416_v41  ;;  %v2889_v56 = vmul.f32 %v2867_v35, %v1419_v45 }
 0x387   : > { %1202 = vst [vmem:[#allocation2 + $0x10] sm:$0xff] %v2880_v63 }
 0x388   : > { %1203 = vst [vmem:[#allocation2 + $0x48] sm:$0xff] %v2883_v52 }
 0x389   : > { %v1407_v58 = vpop.permute.xlu2 %1406 }
 0x38b   : > { %v1253_v48 = vpop.permute.xlu1 %1252  ;;  %v1369_v43 = vpop.permute.xlu0 %1368 }
 0x38c   : > { %v1380_v1 = vsel %vm475_vm4, %v1369_v43, %v2769_v36  ;;  %v1383_v13 = vsel %vm475_vm4, %v2769_v36, %v1369_v43 }
 0x38d   : > { %v2907_v61 = vmul.f32 %v2896_v62, %v1380_v1  ;;  %v2910_v7 = vmul.f32 %v2898_v3, %v1383_v13 }
 0x391   : > { %v1371_v9 = vpop.permute.xlu2 %1370 }
 0x393   : > { %v2912_v21 = vpop.permute.xlu1 %1216  ;;  %v1449_v22 = vpop.permute.xlu0 %1448 }
 0x394   : > { %v1453_v23 = vsel %vm527_vm7, %v1443_v20, %v1449_v22  ;;  %v1456_v33 = vsel %vm527_vm7, %v1449_v22, %v1443_v20 }
 0x395   : > { %v1466_v37 = vmul.f32 %v2834_v14, %v1453_v23  ;;  %v1467_v36 = vmul.f32 %v2836_v16, %v1456_v33 }
 0x399   : > { %v1289_v39 = vpop.permute.xlu2 %1288 }
 0x39b   : > { %v2920_v50 = vpop.permute.xlu1 %1180  ;;  %v1413_v40 = vpop.permute.xlu0 %1412 }
 0x39c   : > { %v1417_v41 = vsel %vm498_vm5, %v1407_v58, %v1413_v40  ;;  %v1420_v45 = vsel %vm498_vm5, %v1413_v40, %v1407_v58 }
 0x39d   : > { %v1430_v57 = vmul.f32 %v2865_v34, %v1417_v41  ;;  %v1431_v43 = vmul.f32 %v2867_v35, %v1420_v45 }
 0x3a1   : > { %v1451_v13 = vpop.permute.xlu2 %1450 }
 0x3a3   : > { %v1283_v1 = vpop.permute.xlu1 %1282  ;;  %v1377_v20 = vpop.permute.xlu0 %1376 }
 0x3a4   : > { %v1292_v22 = vsel %vm399_vm2, %v1283_v1, %v1289_v39  ;;  %v1295_v23 = vsel %vm399_vm2, %v1289_v39, %v1283_v1  ;;  %v1381_v33 = vsel %vm475_vm4, %v1371_v9, %v1377_v20  ;;  %v1384_v15 = vsel %vm475_vm4, %v1377_v20, %v1371_v9 }
 0x3a5   : > { %v1306_v58 = vmul.f32 %v2740_v6, %v1295_v23  ;;  %v1307_v40 = vmul.f32 %v2742_v24, %v1292_v22  ;;  %v1394_v41 = vmul.f32 %v2896_v62, %v1381_v33  ;;  %v2940_v45 = vmul.f32 %v2898_v3, %v1384_v15 }
 0x3a7   : > { %1558 = vmatpush.msrb.mxu3 %v1306_v58  ;;  %1610 = vmatpush.msra.mxu1 %v1307_v40  ;;  %v2015_v40 = vld [vmem:[%s3168_s4 + $0x38] sm:$0xff] }
 0x3a9   : > { %v1415_v58 = vpop.permute.xlu2 %1414 }
 0x3ab   : > { %v1445_v12 = vpop.permute.xlu1 %1444  ;;  %v1281_v42 = vpop.permute.xlu0 %1280 }
 0x3ac   : > { %v1454_v39 = vsel %vm527_vm7, %v1445_v12, %v1451_v13  ;;  %v1457_v1 = vsel %vm527_vm7, %v1451_v13, %v1445_v12  ;;  %v1291_v9 = vsel %vm399_vm2, %v1281_v42, %v2788_v44  ;;  %v1294_v20 = vsel %vm399_vm2, %v2788_v44, %v1281_v42 }
 0x3ad   : > { %v1468_v15 = vmul.f32 %v2834_v14, %v1454_v39  ;;  %v1469_v22 = vmul.f32 %v2836_v16, %v1457_v1  ;;  %v1304_v23 = vmul.f32 %v2740_v6, %v1294_v20  ;;  %v1305_v33 = vmul.f32 %v2742_v24, %v1291_v9 }
 0x3ae   : > { %v1133_v1 = vmul.f32 %v2613_v51, %v2602_v38 }
 0x3af   : > { %1559 = vmatpush.msrb.mxu3 %v1304_v23  ;;  %1585 = vmatpush.msrb.mxu2 %v1468_v15 }
 0x3b0   : > { %1611 = vmatpush.msra.mxu1 %v1305_v33  ;;  %1637 = vmatpush.msra.mxu0 %v1469_v22  ;;  %v1137_v33 = vadd.f32 1.0, %v1133_v1 }
 0x3b1   : > { %1586 = vmatpush.msrb.mxu2 %v1466_v37  ;;  %1560 = vmatpush.msrb.mxu3 %v2753_v31  ;;  %v1379_v37 = vpop.permute.xlu2 %1378 }
 0x3b2   : > { %1612 = vmatpush.msra.mxu1 %v2756_v32  ;;  %1638 = vmatpush.msra.mxu0 %v1467_v36  ;;  %v2093_v36 = vmov 1  }
 0x3b3   : > { %v1409_v42 = vpop.permute.xlu1 %1408  ;;  %v1247_v12 = vpop.permute.xlu0 %1246  ;;  %1587 = vmatpush.msrb.mxu2 %v2855_v29  ;;  %2072 = vset.pattern.permute.xlu0 %v2093_v36 }
 0x3b4   : > { %v1418_v6 = vsel %vm498_vm5, %v1409_v42, %v1415_v58  ;;  %v1421_v24 = vsel %vm498_vm5, %v1415_v58, %v1409_v42  ;;  %v1256_v44 = vsel %vm376_vm8, %v1247_v12, %v1253_v48  ;;  %v1259_v14 = vsel %vm376_vm8, %v1253_v48, %v1247_v12  ;;  %1639 = vmatpush.msra.mxu0 %v2858_v30 }
 0x3b5   : > { %v1432_v31 = vmul.f32 %v2865_v34, %v1418_v6  ;;  %v1433_v32 = vmul.f32 %v2867_v35, %v1421_v24  ;;  %v1270_v16 = vmul.f32 %v2765_v17, %v1259_v14  ;;  %v1271_v29 = vmul.f32 %v2767_v18, %v1256_v44  ;;  %2073 = vset.pattern.permute.xlu1 %v2093_v36  ;;  %v3180_v6 = vld [vmem:[#allocation3_spill] sm:$0xff] }
 0x3b6   : > { %2071 = vset.pattern.permute.xlu2 %v2093_v36  ;;  %v1147_v58 = vmul.f32 %v2629_v4, %v2602_v38  ;;  %v1132_v24 = vmul.f32 %v3180_v6, %v2611_v2  ;;  %v2041_v6 = vld [vmem:[%s3165_s1 + $0x10] ss:$8 sm:$0x3] }
 0x3b7   : > { %1561 = vmatpush.msrb.mxu3 %v1270_v16  ;;  %1588 = vmatpush.msrb.mxu2 %v1432_v31  ;;  %v1141_v31 = vrot.slane %v1137_v33, 4 }
 0x3b8   : > { %1613 = vmatpush.msra.mxu1 %v1271_v29  ;;  %1640 = vmatpush.msra.mxu0 %v1433_v32  ;;  %v1151_v32 = vadd.f32 1.0, %v1147_v58  ;;  %v1136_v29 = vadd.f32 1.0, %v1132_v24 }
 0x3b9   : > { %1562 = vmatpush.msrb.mxu3 %v2824_v11  ;;  %1589 = vmatpush.msrb.mxu2 %v1430_v57  ;;  %v1168_v57 = vld [vmem:[%s3169_s5 + $0x8] sm:$0xff] }
 0x3ba   : > { %1614 = vmatpush.msra.mxu1 %v2827_v0  ;;  %1641 = vmatpush.msra.mxu0 %v1431_v43  ;;  %v1155_v38 = vrot.slane %v1151_v32, 4 }
 0x3bb   : > { %v1373_v30 = vpop.permute.xlu1 %1372  ;;  %v1211_v48 = vpop.permute.xlu0 %1210  ;;  %1563 = vmatpush.msrb.mxu3 %v2776_v55  ;;  %1590 = vmatpush.msrb.mxu2 %v2886_v53 }
 0x3bc   : > { %v1382_v17 = vsel %vm475_vm4, %v1373_v30, %v1379_v37  ;;  %v1385_v18 = vsel %vm475_vm4, %v1379_v37, %v1373_v30  ;;  %v1220_v11 = vsel %vm347_vm1, %v1211_v48, %v2912_v21  ;;  %v1223_v0 = vsel %vm347_vm1, %v2912_v21, %v1211_v48  ;;  %1615 = vmatpush.msra.mxu1 %v2779_v49  ;;  %v1343_v21 = vpop.permute.xlu2 %1342  ;;  %v3181_v37 = vld [vmem:[#allocation4_spill] sm:$0xff] }
 0x3bd   : > { %v1396_v55 = vmul.f32 %v2896_v62, %v1382_v17  ;;  %v1397_v34 = vmul.f32 %v2898_v3, %v1385_v18  ;;  %v1234_v35 = vmul.f32 %v2784_v28, %v1223_v0  ;;  %v1235_v53 = vmul.f32 %v2786_v26, %v1220_v11  ;;  %1642 = vmatpush.msra.mxu0 %v2889_v56 }
 0x3be   : > { %1537 = vperm.xlu0 %2072, %v1168_v57   ;;  %v1146_v30 = vmul.f32 %v3181_v37, %v2611_v2  ;;  %v1145_v11 = vmul.f32 %v1141_v31, %v1133_v1 }
 0x3bf   : > { %1564 = vmatpush.msrb.mxu3 %v1234_v35  ;;  %1591 = vmatpush.msrb.mxu2 %v1396_v55 }
 0x3c0   : > { %1616 = vmatpush.msra.mxu1 %v1235_v53  ;;  %1643 = vmatpush.msra.mxu0 %v1397_v34  ;;  %v1140_v34 = vrot.slane %v1136_v29, 4  ;;  %v1150_v35 = vadd.f32 1.0, %v1146_v30 }
 0x3c1   : > { %1565 = vmatpush.msrb.mxu3 %v2849_v5  ;;  %1592 = vmatpush.msrb.mxu2 %v1394_v41  ;;  %v2019_v41 = vld [vmem:[%s3168_s4 + $0x58] sm:$0xff] }
 0x3c2   : > { %1617 = vmatpush.msra.mxu1 %v2852_v25  ;;  %1644 = vmatpush.msra.mxu0 %v2940_v45 }
 0x3c3   : > { %v1337_v49 = vpop.permute.xlu1 %1336  ;;  %v1175_v62 = vpop.permute.xlu0 %1174  ;;  %1566 = vmatpush.msrb.mxu3 %v2795_v46  ;;  %1593 = vmatpush.msrb.mxu2 %v2907_v61 }
 0x3c4   : > { %v1346_v28 = vsel %vm446_vm3, %v1337_v49, %v1343_v21  ;;  %v1349_v26 = vsel %vm446_vm3, %v1343_v21, %v1337_v49  ;;  %v1184_v5 = vsel %vm325_vm6, %v1175_v62, %v2920_v50  ;;  %v1187_v25 = vsel %vm325_vm6, %v2920_v50, %v1175_v62  ;;  %1618 = vmatpush.msra.mxu1 %v2798_v47  ;;  %v1169_v47 = vld [vmem:[%s3169_s5 + $0x10] sm:$0xff] }
 0x3c5   : > { %v1360_v46 = vmul.f32 %v2719_v19, %v1346_v28  ;;  %v1361_v56 = vmul.f32 %v2721_v54, %v1349_v26  ;;  %v1198_v3 = vmul.f32 %v2805_v60, %v1187_v25  ;;  %v1199_v61 = vmul.f32 %v2807_v59, %v1184_v5  ;;  %1645 = vmatpush.msra.mxu0 %v2910_v7  ;;  %v2014_v60 = vld [vmem:[%s3168_s4 + $0x30] sm:$0xff]  ;;  %v1167_v59 = vld [vmem:[%s3169_s5] sm:$0xff] }
 0x3c6   : > { %1542 = vperm.xlu1 %2073, %v1169_v47   ;;  %1532 = vperm.xlu2 %2071, %v1167_v59   ;;  %v1149_v62 = vadd.f32 %v1147_v58, %v1145_v11 }
 0x3c7   : > { %1567 = vmatpush.msrb.mxu3 %v1198_v3  ;;  %1594 = vmatpush.msrb.mxu2 %v1360_v46  ;;  %1204 = vst [vmem:[#allocation2 + $0x160] sm:$0xff] %v1198_v3  ;;  %v1154_v3 = vrot.slane %v1150_v35, 4 }
 0x3c8   : > { %1619 = vmatpush.msra.mxu1 %v1199_v61  ;;  %1646 = vmatpush.msra.mxu0 %v1361_v56  ;;  %1205 = vst [vmem:[#allocation2 + $0x128] sm:$0xff] %v1199_v61  ;;  %v1159_v5 = vmul.f32 %v1155_v38, %v1149_v62  ;;  %v1144_v56 = vmul.f32 %v1140_v34, %v1132_v24  ;;  %v2040_v24 = vld [vmem:[%s3165_s1 + $0x7] ss:$8 sm:$0x3] }
 0x3c9   : > { %1568 = vmatpush.msrb.mxu3 %v2880_v63  ;;  %v1820_v31 = vperm.slane %v2040_v24, 0  ;;  %v1821_v32 = vperm.slane %v2040_v24, 1 }
 0x3ca   : > { %1620 = vmatpush.msra.mxu1 %v2883_v52  ;;  %v1148_v59 = vadd.f32 %v1146_v30, %v1144_v56  ;;  %v2038_v56 = vld [vmem:[%s3165_s1 + $0x5] ss:$8 sm:$0x3] }
 0x3cb   : > { %v1341_v7 = vpop.permute.xlu1 %1340  ;;  %v1335_v50 = vpop.permute.xlu0 %1334  ;;  %1569 = vmatpush.msrb.mxu3 %v2818_v8  ;;  %v2016_v8 = vld [vmem:[%s3168_s4 + $0x40] sm:$0xff] }
 0x3cc   : > { %v1345_v63 = vsel %vm446_vm3, %v1335_v50, %v1341_v7  ;;  %v1348_v43 = vsel %vm446_vm3, %v1341_v7, %v1335_v50  ;;  %1621 = vmatpush.msra.mxu1 %v2821_v10  ;;  %1570 = vmatmul.f32.vlgmr.msrb.gmra.mxu3 %v2014_v60  ;;  %v3179_v10 = vmov 0  }
 0x3cd   : > { %v1358_v52 = vmul.f32 %v2719_v19, %v1345_v63  ;;  %v1359_v13 = vmul.f32 %v2721_v54, %v1348_v43  ;;  %1622 = vmatmul.f32.vlgmr.msra.gmra.mxu1 %v2014_v60  ;;  %2075 = vset.pattern.permute.xlu0 %v3179_v10  ;;  %v2017_v19 = vld [vmem:[%s3168_s4 + $0x48] sm:$0xff]  ;;  %v2018_v54 = vld [vmem:[%s3168_s4 + $0x50] sm:$0xff]  ;;  %v1158_v43 = vmul.f32 %v1154_v3, %v1148_v59  ;;  %v1783_v59 = vperm.slane %v2038_v56, 1 }
 0x3ce   : > { %2074 = vset.pattern.permute.xlu1 %v3179_v10  ;;  %v2037_v60 = vld [vmem:[%s3165_s1 + $0x4] ss:$8 sm:$0x3] }
 0x3cf   : > { %1595 = vmatpush.msrb.mxu2 %v1358_v52  ;;  %1647 = vmatpush.msra.mxu0 %v1359_v13  ;;  %v1767_v13 = vperm.slane %v2037_v60, 1 }
 0x3d0   : > { %2028 = vmatmul.msk.f32.vlgmr.msrb.gmra.mxu2 %vm1018_vm10, %v2015_v40  ;;  %2031 = vmatmul.msk.f32.vlgmr.msra.gmra.mxu0 %vm1018_vm10, %v2015_v40 }
 0x3d4   : > { %1573 = vmatmul.f32.gmra.mxu3 %v2016_v8 }
 0x3d5   : > { %1625 = vmatmul.f32.gmra.mxu1 %v2016_v8 }
 0x3d8   : > { %2029 = vmatmul.msk.f32.gmra.mxu2 %vm1018_vm10, %v2017_v19  ;;  %2032 = vmatmul.msk.f32.gmra.mxu0 %vm1018_vm10, %v2017_v19 }
 0x3dc   : > { %1576 = vmatmul.f32.gmra.mxu3 %v2018_v54 }
 0x3dd   : > { %1628 = vmatmul.f32.gmra.mxu1 %v2018_v54 }
 0x3e0   : > { %2030 = vmatmul.msk.f32.gmra.mxu2 %vm1018_vm10, %v2019_v41  ;;  %2033 = vmatmul.msk.f32.gmra.mxu0 %vm1018_vm10, %v2019_v41 }
 0x420   : > { %v1533_v9 = vpop.permute.xlu2 %1532 }
 0x430   : > { %v1538_v15 = vpop.permute.xlu0 %1537 }
 0x438   : > { %v1543_v18 = vpop.permute.xlu1 %1542 }
 0x44a   : > { %v1623_v45 = vpop.f32.mrf.mxu1 }
 0x44b   : > { %v1624_v22 = vadd.f32 %v1623_v45, %v1533_v9 }
 0x44d   : > { %v1649_v39 = vpop.f32.mrf.mxu0 }
 0x44e   : > { %v1650_v14 = vadd.f32 %v1649_v39, %v1624_v22  ;;  %v1766_v22 = vperm.slane %v2037_v60, 0  ;;  %v1782_v60 = vperm.slane %v2038_v56, 0 }
 0x44f   : > { %v1571_v20 = vpop.f32.mrf.mxu3 }
 0x450   : > { %v1572_v48 = vadd.f32 %v1571_v20, %v1533_v9 }
 0x452   : > { %v1626_v23 = vpop.f32.mrf.mxu1 }
 0x453   : > { %v1597_v42 = vpop.f32.mrf.mxu2  ;;  %v1627_v12 = vadd.f32 %v1626_v23, %v1538_v15 }
 0x454   : > { %v1598_v49 = vadd.f32 %v1597_v42, %v1572_v48 }
 0x455   : > { %v1652_v44 = vpop.f32.mrf.mxu0 }
 0x456   : > { %v1653_v16 = vadd.f32 %v1652_v44, %v1627_v12  ;;  %v1842_v44 = vperm.slane %v2041_v6, 0 }
 0x457   : > { %v1574_v51 = vpop.f32.mrf.mxu3 }
 0x458   : > { %v1659_v17 = vmul.f32 %v1653_v16, %v1650_v14  ;;  %v1575_v0 = vadd.f32 %v1574_v51, %v1538_v15 }
 0x45a   : > { %v1663_v4 = vadd.f32 1.0, %v1659_v17  ;;  %v1629_v55 = vpop.f32.mrf.mxu1  ;;  %v1661_v36 = vadd.f32 %v1659_v17, %v1159_v5 }
 0x45b   : > { %v1600_v53 = vpop.f32.mrf.mxu2  ;;  %v1630_v21 = vadd.f32 %v1629_v55, %v1543_v18 }
 0x45c   : > { %v1601_v28 = vadd.f32 %v1600_v53, %v1575_v0  ;;  %v1667_v25 = vrot.slane %v1663_v4, 4  ;;  %v2036_v0 = vld [vmem:[%s3165_s1 + $0x3] ss:$8 sm:$0x3] }
 0x45d   : > { %v1655_v26 = vpop.f32.mrf.mxu0  ;;  %v1750_v35 = vperm.slane %v2036_v0, 0  ;;  %v1751_v53 = vperm.slane %v2036_v0, 1 }
 0x45e   : > { %v1658_v46 = vmul.f32 %v1601_v28, %v1598_v49  ;;  %v1656_v2 = vadd.f32 %v1655_v26, %v1630_v21  ;;  %v1671_v7 = vmul.f32 %v1667_v25, %v1661_v36 }
 0x45f   : > { %v1577_v61 = vpop.f32.mrf.mxu3 }
 0x460   : > { %v1662_v57 = vadd.f32 1.0, %v1658_v46  ;;  %v1673_v47 = vmul.f32 %v1656_v2, %v1650_v14  ;;  %v1578_v63 = vadd.f32 %v1577_v61, %v1543_v18  ;;  %v1660_v54 = vadd.f32 %v1658_v46, %v1158_v43  ;;  %v2039_v46 = vld [vmem:[%s3165_s1 + $0x6] ss:$8 sm:$0x3] }
 0x461   : > { %v1843_v14 = vperm.slane %v2041_v6, 1  ;;  %v1694_v6 = vld [vmem:[%s3165_s1] ss:$8 sm:$0x3] }
 0x462   : > { %v1677_v50 = vadd.f32 1.0, %v1673_v47  ;;  %v1666_v40 = vrot.slane %v1662_v57, 4  ;;  %v1675_v8 = vadd.f32 %v1673_v47, %v1671_v7  ;;  %v1804_v57 = vperm.slane %v2039_v46, 0 }
 0x463   : > { %v1603_v52 = vpop.f32.mrf.mxu2  ;;  %v1805_v47 = vperm.slane %v2039_v46, 1 }
 0x464   : > { %v1681_v10 = vrot.slane %v1677_v50, 4  ;;  %v1604_v19 = vadd.f32 %v1603_v52, %v1578_v63  ;;  %v1670_v39 = vmul.f32 %v1666_v40, %v1660_v54 }
 0x466   : > { %v1685_v41 = vmul.f32 %v1681_v10, %v1675_v8  ;;  %v1672_v45 = vmul.f32 %v1604_v19, %v1598_v49  ;;  %v1687_v10 = vld [vmem:[%s3171_s7] sm:$0x7] }
 0x468   : > { %v1676_v1 = vadd.f32 1.0, %v1672_v45  ;;  %1776 = vrot.lane.b32.xlu2 %v1685_v41, %s2087_s16  ;;  %1836 = vrot.lane.b32.xlu0 %v1685_v41, %s2091_s20  ;;  %v1771_v9 = vmul.f32 %v1767_v13, %v1685_v41  ;;  %v1674_v20 = vadd.f32 %v1672_v45, %v1670_v39 }
 0x469   : > { %1814 = vrot.lane.b32.xlu1 %v1685_v41, %s2089_s18 }
 0x46a   : > { %v1680_v15 = vrot.slane %v1676_v1, 4  ;;  %1773 = vst [vmem:[#allocation2 + $0x128] sm:$0xf] %v1771_v9 }
 0x46c   : > { %v1684_v23 = vmul.f32 %v1680_v15, %v1674_v20 }
 0x46e   : > { %v1770_v33 = vmul.f32 %v1766_v22, %v1684_v23 }
 0x470   : > { %1706 = vrot.lane.b32.xlu2 %v1685_v41, %s2084_s13  ;;  %1744 = vrot.lane.b32.xlu0 %v1685_v41, %s2086_s15  ;;  %1772 = vst [vmem:[#allocation2 + $0x160] sm:$0xf] %v1770_v33 }
 0x471   : > { %1798 = vrot.lane.b32.xlu1 %v1685_v41, %s2088_s17 }
 0x478   : > { %1796 = vrot.lane.b32.xlu0 %v1684_v23, %s2088_s17  ;;  %1812 = vrot.lane.b32.xlu2 %v1684_v23, %s2089_s18 }
 0x479   : > { %1774 = vrot.lane.b32.xlu1 %v1684_v23, %s2087_s16 }
 0x480   : > { %1726 = vrot.lane.b32.xlu0 %v1684_v23, %s2085_s14  ;;  %1834 = vrot.lane.b32.xlu2 %v1684_v23, %s2091_s20  ;;  %s305_s20 = scalar_lea.vmem %s3172_s8, %s2048_s29 }
 0x481   : > { %1704 = vrot.lane.b32.xlu1 %v1684_v23, %s2084_s13 }
 0x488   : > { %1690 = vrot.lane.b32.xlu0 %v1685_v41, %s2090_s19  ;;  %1742 = vrot.lane.b32.xlu2 %v1684_v23, %s2086_s15 }
 0x489   : > { %1728 = vrot.lane.b32.xlu1 %v1685_v41, %s2085_s14  ;;  %v2034_v41 = vld [vmem:[%s3165_s1 + $0x1] ss:$8 sm:$0x3] }
 0x48a   : > { %v1712_v1 = vperm.slane %v2034_v41, 0  ;;  %v1713_v9 = vperm.slane %v2034_v41, 1 }
 0x490   : > { %1688 = vrot.lane.b32.xlu2 %v1684_v23, %s2090_s19 }
 0x491   : > { %1862 = vperm.xlu1 %2074, %v1687_v10  }
 0x4c2   : > { %v1777_v58 = vpop.permute.xlu2 %1776 }
 0x4ca   : > { %v3085_v42 = vpop.permute.xlu2 %1706 }
 0x4d2   : > { %v1813_v12 = vpop.permute.xlu2 %1812 }
 0x4da   : > { %v1837_v16 = vpop.permute.xlu0 %1836  ;;  %v1835_v51 = vpop.permute.xlu2 %1834 }
 0x4db   : > { %v1815_v29 = vpop.permute.xlu1 %1814  ;;  %v1838_v37 = vsel %vm527_vm7, %v1835_v51, %v1837_v16  ;;  %v1839_v30 = vsel %vm527_vm7, %v1837_v16, %v1835_v51  ;;  %v1696_v16 = vperm.slane %v1694_v6, 0  ;;  %v1697_v51 = vperm.slane %v1694_v6, 1 }
 0x4dc   : > { %v1816_v48 = vsel %vm498_vm5, %v1813_v12, %v1815_v29  ;;  %v1817_v17 = vsel %vm498_vm5, %v1815_v29, %v1813_v12  ;;  %v1846_v18 = vmul.f32 %v1842_v44, %v1838_v37  ;;  %v1847_v11 = vmul.f32 %v1843_v14, %v1839_v30  ;;  %v2035_v44 = vld [vmem:[%s3165_s1 + $0x2] ss:$8 sm:$0x3] }
 0x4dd   : > { %v1824_v38 = vmul.f32 %v1820_v31, %v1816_v48  ;;  %v1825_v4 = vmul.f32 %v1821_v32, %v1817_v17  ;;  %v1734_v29 = vperm.slane %v2035_v44, 0  ;;  %v1735_v37 = vperm.slane %v2035_v44, 1 }
 0x4de   : > { %1848 = vst [vmem:[#allocation2 + $0x108] sm:$0xf] %v1846_v18 }
 0x4df   : > { %v1828_v55 = vrot.slane %v1824_v38, 4  ;;  %v1829_v34 = vrot.slane %v1825_v4, 4  ;;  %1849 = vst [vmem:[#allocation2 + $0x110] sm:$0xf] %v1847_v11 }
 0x4e1   : > { %1832 = vst [vmem:[#allocation2 + $0x40] sm:$0xf0] %v1828_v55 }
 0x4e2   : > { %1833 = vst [vmem:[#allocation2 + $0x178] sm:$0xf0] %v1829_v34  ;;  %v1745_v21 = vpop.permute.xlu0 %1744  ;;  %v1743_v49 = vpop.permute.xlu2 %1742 }
 0x4e3   : > { %v1799_v62 = vpop.permute.xlu1 %1798  ;;  %v1746_v28 = vsel %vm399_vm2, %v1743_v49, %v1745_v21  ;;  %v1747_v26 = vsel %vm399_vm2, %v1745_v21, %v1743_v49  ;;  %v1686_v49 = vld [vmem:[%s3170_s6] sm:$0x7] }
 0x4e4   : > { %v1754_v5 = vmul.f32 %v1750_v35, %v1747_v26  ;;  %v1755_v25 = vmul.f32 %v1751_v53, %v1746_v28 }
 0x4e5   : > { %v1858_v2 = vld [vmem:[#allocation2 + $0x108] sm:$0xf] }
 0x4e6   : > { %v1758_v3 = vrot.slane %v1754_v5, 4  ;;  %v1759_v61 = vrot.slane %v1755_v25, 4  ;;  %2042 = vmatpush.msk.msra.mxu3 %vm425_vm0, %v1858_v2  ;;  %v1859_v36 = vld [vmem:[#allocation2 + $0x110] sm:$0xf] }
 0x4e7   : > { %2044 = vmatpush.msk.msra.mxu2 %vm425_vm0, %v1859_v36 }
 0x4e8   : > { %1762 = vst [vmem:[#allocation2 + $0x10] sm:$0xf0] %v1758_v3 }
 0x4e9   : > { %1763 = vst [vmem:[#allocation2 + $0x48] sm:$0xf0] %v1759_v61 }
 0x4ea   : > { %v1797_v7 = vpop.permute.xlu0 %1796  ;;  %v1689_v30 = vpop.permute.xlu2 %1688 }
 0x4eb   : > { %v1800_v50 = vsel %vm475_vm4, %v1797_v7, %v1799_v62  ;;  %v1801_v63 = vsel %vm475_vm4, %v1799_v62, %v1797_v7  ;;  %v1775_v43 = vpop.permute.xlu1 %1774 }
 0x4ec   : > { %v1808_v52 = vmul.f32 %v1804_v57, %v1800_v50  ;;  %v1809_v13 = vmul.f32 %v1805_v47, %v1801_v63  ;;  %v1778_v40 = vsel %vm446_vm3, %v1775_v43, %v1777_v58  ;;  %v1779_v8 = vsel %vm446_vm3, %v1777_v58, %v1775_v43 }
 0x4ed   : > { %v1786_v19 = vmul.f32 %v1782_v60, %v1778_v40  ;;  %v1787_v54 = vmul.f32 %v1783_v59, %v1779_v8 }
 0x4ee   : > { %1810 = vst [vmem:[#allocation2 + $0x40] sm:$0xf] %v1808_v52 }
 0x4ef   : > { %1811 = vst [vmem:[#allocation2 + $0x178] sm:$0xf] %v1809_v13  ;;  %v1790_v45 = vrot.slane %v1786_v19, 4  ;;  %v1791_v39 = vrot.slane %v1787_v54, 4 }
 0x4f1   : > { %1794 = vst [vmem:[#allocation2 + $0x160] sm:$0xf0] %v1790_v45 }
 0x4f2   : > { %1795 = vst [vmem:[#allocation2 + $0x128] sm:$0xf0] %v1791_v39  ;;  %v1727_v20 = vpop.permute.xlu0 %1726 }
 0x4f3   : > { %v1705_v15 = vpop.permute.xlu1 %1704 }
 0x4f4   : > { %v1708_v22 = vsel %vm347_vm1, %v1705_v15, %v3085_v42  ;;  %v1709_v23 = vsel %vm347_vm1, %v3085_v42, %v1705_v15 }
 0x4f5   : > { %v1716_v33 = vmul.f32 %v1712_v1, %v1709_v23  ;;  %v1717_v58 = vmul.f32 %v1713_v9, %v1708_v22  ;;  %v1856_v12 = vld [vmem:[#allocation2 + $0x40] sm:$0xff] }
 0x4f6   : > { %1886 = vmatpush.msra.mxu3 %v1856_v12  ;;  %v1857_v24 = vld [vmem:[#allocation2 + $0x178] sm:$0xff] }
 0x4f7   : > { %v1720_v14 = vrot.slane %v1716_v33, 4  ;;  %v1721_v31 = vrot.slane %v1717_v58, 4  ;;  %1906 = vmatpush.msra.mxu2 %v1857_v24 }
 0x4f8   : > { %v1854_v32 = vld [vmem:[#allocation2 + $0x160] sm:$0xff] }
 0x4f9   : > { %1724 = vst [vmem:[#allocation2 + $0xb0] sm:$0xf0] %v1720_v14  ;;  %1887 = vmatpush.msra.mxu3 %v1854_v32  ;;  %v1855_v42 = vld [vmem:[#allocation2 + $0x128] sm:$0xff] }
 0x4fa   : > { %1725 = vst [vmem:[#allocation2 + $0xd0] sm:$0xf0] %v1721_v31  ;;  %1907 = vmatpush.msra.mxu2 %v1855_v42  ;;  %v1691_v48 = vpop.permute.xlu0 %1690 }
 0x4fb   : > { %v1692_v17 = vsel %vm325_vm6, %v1689_v30, %v1691_v48  ;;  %v1693_v18 = vsel %vm325_vm6, %v1691_v48, %v1689_v30  ;;  %v1729_v11 = vpop.permute.xlu1 %1728 }
 0x4fc   : > { %v1700_v38 = vmul.f32 %v1696_v16, %v1693_v18  ;;  %v1701_v4 = vmul.f32 %v1697_v51, %v1692_v17  ;;  %v1730_v0 = vsel %vm376_vm8, %v1727_v20, %v1729_v11  ;;  %v1731_v55 = vsel %vm376_vm8, %v1729_v11, %v1727_v20 }
 0x4fd   : > { %v1738_v34 = vmul.f32 %v1734_v29, %v1731_v55  ;;  %v1739_v35 = vmul.f32 %v1735_v37, %v1730_v0 }
 0x4fe   : > { %1702 = vst [vmem:[#allocation2 + $0xb0] sm:$0xf] %v1700_v38 }
 0x4ff   : > { %1703 = vst [vmem:[#allocation2 + $0xd0] sm:$0xf] %v1701_v4 }
 0x500   : > { %1740 = vst [vmem:[#allocation2 + $0x10] sm:$0xf] %v1738_v34 }
 0x501   : > { %1741 = vst [vmem:[#allocation2 + $0x48] sm:$0xf] %v1739_v35 }
 0x503   : > { %v1863_v27 = vpop.permute.xlu1 %1862 }
 0x505   : > { %v1850_v62 = vld [vmem:[#allocation2 + $0xb0] sm:$0xff] }
 0x506   : > { %v1851_v28 = vld [vmem:[#allocation2 + $0xd0] sm:$0xff] }
 0x507   : > { %v1852_v53 = vld [vmem:[#allocation2 + $0x10] sm:$0xff] }
 0x508   : > { %1888 = vmatpush.msra.mxu3 %v1852_v53  ;;  %v1853_v21 = vld [vmem:[#allocation2 + $0x48] sm:$0xff] }
 0x509   : > { %1908 = vmatpush.msra.mxu2 %v1853_v21 }
 0x50a   : > { %1889 = vmatpush.msra.mxu3 %v1850_v62 }
 0x50b   : > { %1909 = vmatpush.msra.mxu2 %v1851_v28  ;;  %2043 = vmatmul.msk.f32.vlgmr.msra.gmra.mxu3 %vm566_vm9, %v1686_v49 }
 0x50c   : > { %2045 = vmatmul.msk.f32.vlgmr.msra.gmra.mxu2 %vm566_vm9, %v1686_v49 }
 0x58e   : > { %v1891_v5 = vpop.f32.mrf.mxu3 }
 0x58f   : > { %v1911_v26 = vpop.f32.mrf.mxu2  ;;  %v1892_v2 = vadd.f32 %v1891_v5, %v1863_v27 }
 0x590   : > { %v1912_v25 = vadd.f32 %v1911_v26, %v1863_v27 }
 0x592   : > { %v1916_v46 = vrot.slane %v1912_v25, 4 }
 0x594   : > { %v1917_v56 = vsel %vm425_vm0, %v1892_v2, %v1916_v46 }
 0x595   : > { %1919 = vst [vmem:[%s305_s20] sm:$0x77] %v1917_v56 }
 0x596 PF: > { %s18_s27 = sadd.s32 1, %s2082_s27  }
 0x597   : > { %p15_p4 = scmp.ge.s32.totalorder %s18_s27, 4  }
 0x599   :  { %17 = sbr.rel (!%p15_p4) target bundleno = 1 (0x1), region = 91 }

</bundles_post_ra>
